<compile_context>
chip_gen: v6e
topology: v6e:2x2x1
jax: 0.10.0
libtpu: 0.0.40
codegen_flags: <defaults>
</compile_context>

<pallas_src>
import math
import jax
import jax.numpy as jnp
from jax.experimental import pallas as pl
from jax.experimental.pallas import tpu as pltpu


# ----------------------------------------------------------------------------
# Pallas kernels
# ----------------------------------------------------------------------------
def _trunk_kernel(x_ref,
                  w1_ref, b1_ref, g1_ref, be1_ref,
                  w2_ref, b2_ref, g2_ref, be2_ref,
                  w3_ref, b3_ref, g3_ref, be3_ref,
                  o_ref):
    """Fused Linear -> LeakyReLU(0.02) -> LayerNorm, three times (f32 math)."""
    def stage(h, w_r, b_r, g_r, be_r):
        y = jnp.dot(h, w_r[...], preferred_element_type=jnp.float32) + b_r[...]
        y = jnp.where(y >= 0, y, 0.02 * y)                      # LeakyReLU(0.02)
        mu = jnp.mean(y, axis=-1, keepdims=True)                # LayerNorm
        var = jnp.mean((y - mu) * (y - mu), axis=-1, keepdims=True)
        yn = (y - mu) * jax.lax.rsqrt(var + 1e-5)
        return yn * g_r[...] + be_r[...]

    h = x_ref[...]
    h = stage(h, w1_ref, b1_ref, g1_ref, be1_ref)
    h = stage(h, w2_ref, b2_ref, g2_ref, be2_ref)
    h = stage(h, w3_ref, b3_ref, g3_ref, be3_ref)
    # Emit the activation in the head's streaming dtype (bf16) directly.
    o_ref[...] = h.astype(o_ref.dtype)


def _head_kernel(h_ref, w_ref, b_ref, o_ref):
    """One output-column tile of the final Linear(1000 -> 125557).

    h_ref : (B, K)       bf16  (constant block index -> stays resident in VMEM)
    w_ref : (K, tile_n)  bf16  (leading tile dim squeezed; contiguous per tile)
    b_ref : (1, tile_n)  f32
    o_ref : (B, tile_n)  f32
    """
    o_ref[...] = (
        jnp.dot(h_ref[...], w_ref[...], preferred_element_type=jnp.float32)
        + b_ref[...]
    )


# ----------------------------------------------------------------------------
# Tile selection (per TPU generation) and wrappers
# ----------------------------------------------------------------------------
def _default_head_tile_n():
    """Pick tile_n from the device generation (HBM-bound head, see review)."""
    try:
        kind = jax.devices()[0].device_kind.lower()
    except Exception:
        return 2048
    if "v7" in kind:
        return 8192          # 16 tiles, 8 per TensorCore; needs explicit vmem limit
    if "v6" in kind:
        return 4096          # 31 tiles; 2x8 MB weight buffers fit the 32 MiB default
    if "v5" in kind and ("lite" in kind or "v5e" in kind):
        return 2048          # v5e: ~0.82 TB/s -> step overhead already small
    if "v5" in kind:
        return 4096          # v5p
    return 2048              # unknown / older: safest choice


def trunk_forward(x, params):
    (w1, b1, g1, be1, w2, b2, g2, be2, w3, b3, g3, be3) = params
    B = x.shape[0]
    D3 = w3.shape[1]
    return pl.pallas_call(
        _trunk_kernel,
        out_shape=jax.ShapeDtypeStruct((B, D3), jnp.bfloat16),
    )(x, w1, b1, g1, be1, w2, b2, g2, be2, w3, b3, g3, be3)


def head_forward(h, w4_tiled, b4_pad, n_out, *, weight_buffers=2):
    """h: (B, K) bf16 ; w4_tiled: (n_tiles, K, tile_n) bf16 ;
    b4_pad: (1, n_tiles*tile_n) f32 -> (B, n_out) f32."""
    B, K = h.shape
    n_tiles, K_w, tile_n = w4_tiled.shape
    assert K_w == K

    # Explicit scoped-VMEM budget derived from the actual buffers (+25% headroom).
    vmem_limit = int(
        (weight_buffers * K * tile_n * 2     # streamed bf16 weight tiles
         + 2 * B * K * 2                     # resident bf16 activation (dbl-buffered)
         + 2 * 1 * tile_n * 4                # bias
         + 2 * B * tile_n * 4) * 1.25        # output tiles
    ) + (4 << 20)

    # Only request non-default buffering when asked (keeps the default path
    # identical to the known-good configuration).
    w_spec_kwargs = {}
    if weight_buffers != 2:
        w_spec_kwargs["pipeline_mode"] = pl.Buffered(weight_buffers)

    cost = pl.CostEstimate(
        flops=2 * B * K * n_tiles * tile_n,
        transcendentals=0,
        bytes_accessed=int(
            w4_tiled.size * w4_tiled.dtype.itemsize     # dominant weight stream
            + h.size * h.dtype.itemsize
            + b4_pad.size * 4
            + B * n_out * 4
        ),
    )

    return pl.pallas_call(
        _head_kernel,
        out_shape=jax.ShapeDtypeStruct((B, n_out), jnp.float32),
        grid_spec=pltpu.PrefetchScalarGridSpec(
            num_scalar_prefetch=0,
            grid=(n_tiles,),
            in_specs=[
                pl.BlockSpec((B, K), lambda j: (0, 0)),               # resident
                pl.BlockSpec((None, K, tile_n), lambda j: (j, 0, 0),   # 1 contiguous DMA/tile
                             **w_spec_kwargs),
                pl.BlockSpec((1, tile_n), lambda j: (0, j)),
            ],
            out_specs=pl.BlockSpec((B, tile_n), lambda j: (0, j)),
        ),
        compiler_params=pltpu.CompilerParams(
            dimension_semantics=("parallel",),   # v7x: tiles shard across 2 TCs
            vmem_limit_bytes=vmem_limit,
        ),
        cost_estimate=cost,
    )(h, w4_tiled, b4_pad)


def regression_forward(x, params):
    trunk_params, (w4_tiled, b4_pad), n_out = params
    h = trunk_forward(x, trunk_params)          # (B, 1000) bf16
    # TODO(synk): on v7x, hide the trunk + launch latency behind the head via a
    # cross-call weight-tile prefetch (P10); not worth it on v5e/v6e.
    return head_forward(h, w4_tiled, b4_pad, n_out)


# ----------------------------------------------------------------------------
# Deterministic parameter initialization (mirrors _initialize_weights):
#   Linear: kaiming_uniform_(a=sqrt(5)) => U(-1/sqrt(fan_in), 1/sqrt(fan_in)),
#           bias = 0 (nn.init.zeros_)
#   LayerNorm: weight = 1, bias = 0, eps = 1e-5
# Head weight is padded + pre-tiled + cast to bf16 ONCE here (not per call).
# ----------------------------------------------------------------------------
def init_params(key, n_out=125557, *, tile_n=None, head_dtype=jnp.bfloat16,
                return_f32_head=False):
    if tile_n is None:
        tile_n = _default_head_tile_n()
    dims = [3, 100, 300, 1000, n_out]
    keys = jax.random.split(key, 4)

    def lin(k, fan_in, fan_out):
        bound = 1.0 / math.sqrt(fan_in)
        w = jax.random.uniform(k, (fan_in, fan_out), jnp.float32, -bound, bound)
        b = jnp.zeros((1, fan_out), jnp.float32)
        return w, b

    w1, b1 = lin(keys[0], dims[0], dims[1])
    w2, b2 = lin(keys[1], dims[1], dims[2])
    w3, b3 = lin(keys[2], dims[2], dims[3])
    w4, b4 = lin(keys[3], dims[3], dims[4])

    g1, be1 = jnp.ones((1, dims[1]), jnp.float32), jnp.zeros((1, dims[1]), jnp.float32)
    g2, be2 = jnp.ones((1, dims[2]), jnp.float32), jnp.zeros((1, dims[2]), jnp.float32)
    g3, be3 = jnp.ones((1, dims[3]), jnp.float32), jnp.zeros((1, dims[3]), jnp.float32)

    # One-time layout work for the head: zero-pad the column axis to a multiple
    # of tile_n, re-layout tile-major (contiguous per tile), cast to bf16.
    K = dims[3]
    n_tiles = pl.cdiv(n_out, tile_n)
    n_pad = n_tiles * tile_n
    w4p = jnp.pad(w4, ((0, 0), (0, n_pad - n_out)))
    w4_tiled = (w4p.reshape(K, n_tiles, tile_n)
                .transpose(1, 0, 2)               # (n_tiles, K, tile_n)
                .astype(head_dtype))
    b4_pad = jnp.pad(b4, ((0, 0), (0, n_pad - n_out)))   # keep bias f32

    trunk = (w1, b1, g1, be1, w2, b2, g2, be2, w3, b3, g3, be3)
    params = (trunk, (w4_tiled, b4_pad), n_out)
    if return_f32_head:
        return params, (w4, b4)
    return params


# ----------------------------------------------------------------------------
# References for validation.
#   * reference_forward_quantized: uses the SAME stored (bf16) params, so it
#     validates the kernels against their own parameters (tight tolerance).
#   * reference_forward_f32: full-f32 trunk + f32 head weight (the original
#     PyTorch-module numerics), bounding the bf16 storage error (looser tol).
# ----------------------------------------------------------------------------
def _ref_trunk(x, trunk):
    (w1, b1, g1, be1, w2, b2, g2, be2, w3, b3, g3, be3) = trunk

    def stage(h, w, b, g, be):
        y = h @ w + b
        y = jnp.where(y >= 0, y, 0.02 * y)
        mu = jnp.mean(y, axis=-1, keepdims=True)
        var = jnp.mean((y - mu) ** 2, axis=-1, keepdims=True)
        return (y - mu) * jax.lax.rsqrt(var + 1e-5) * g + be

    h = stage(x, w1, b1, g1, be1)
    h = stage(h, w2, b2, g2, be2)
    h = stage(h, w3, b3, g3, be3)
    return h


def reference_forward_quantized(x, params):
    trunk, (w4_tiled, b4_pad), n_out = params
    h = _ref_trunk(x, trunk)
    h = h.astype(jnp.bfloat16).astype(jnp.float32)      # match kernel rounding
    n_tiles, K, tile_n = w4_tiled.shape
    w_full = (w4_tiled.astype(jnp.float32)
              .transpose(1, 0, 2).reshape(K, n_tiles * tile_n))
    out = h @ w_full + b4_pad
    return out[:, :n_out]


def reference_forward_f32(x, params, w4_f32, b4_f32):
    trunk, _, n_out = params
    h = _ref_trunk(x, trunk)                             # pure f32, no rounding
    out = jnp.dot(h, w4_f32, precision=jax.lax.Precision.HIGHEST) + b4_f32
    return out[:, :n_out]


# ----------------------------------------------------------------------------
if __name__ == "__main__":
    key = jax.random.PRNGKey(0)
    k_param, k_x = jax.random.split(key)

    N_OUT = 125557          # fixed by the module (8 HDF blocks of grid points)
    B = 8                   # small batch of (x, y, z)-style 3-vectors

    params, (w4_f32, b4_f32) = init_params(k_param, n_out=N_OUT,
                                           return_f32_head=True)
    x = jax.random.normal(k_x, (B, 3), jnp.float32)

    out = regression_forward(x, params)
    out = jax.block_until_ready(out)
    assert out.shape == (B, N_OUT), out.shape

    # 1) kernel vs its own (bf16-stored) parameters — tight tolerance.
    ref_q = jax.block_until_ready(reference_forward_quantized(x, params))
    err_q = float(jnp.max(jnp.abs(out - ref_q)))
    assert jnp.allclose(out, ref_q, rtol=2e-3, atol=2e-3), err_q

    # 2) one-off check vs the full-f32 module numerics — bounds the bf16
    #    head-weight / activation quantization error.
    ref_f = jax.block_until_ready(reference_forward_f32(x, params, w4_f32, b4_f32))
    err_f = float(jnp.max(jnp.abs(out - ref_f)))
    assert jnp.allclose(out, ref_f, rtol=3e-2, atol=3e-2), err_f

    print("KERNEL_OK")
</pallas_src>

<mosaic_0001>
module attributes {stable_mosaic.version = 11 : i64} {
  func.func @_trunk_kernel(%arg0: memref<8x3xf32, #tpu.memory_space<vmem>>, %arg1: memref<3x100xf32, #tpu.memory_space<vmem>>, %arg2: memref<1x100xf32, #tpu.memory_space<vmem>>, %arg3: memref<1x100xf32, #tpu.memory_space<vmem>>, %arg4: memref<1x100xf32, #tpu.memory_space<vmem>>, %arg5: memref<100x300xf32, #tpu.memory_space<vmem>>, %arg6: memref<1x300xf32, #tpu.memory_space<vmem>>, %arg7: memref<1x300xf32, #tpu.memory_space<vmem>>, %arg8: memref<1x300xf32, #tpu.memory_space<vmem>>, %arg9: memref<300x1000xf32, #tpu.memory_space<vmem>>, %arg10: memref<1x1000xf32, #tpu.memory_space<vmem>>, %arg11: memref<1x1000xf32, #tpu.memory_space<vmem>>, %arg12: memref<1x1000xf32, #tpu.memory_space<vmem>>, %arg13: memref<8x1000xbf16, #tpu.memory_space<vmem>>) attributes {dimension_semantics = [], scalar_prefetch = 0 : i64, scratch_operands = 0 : i64, tpu.core_type = #tpu.core_type<tc>} {
    %c0 = arith.constant 0 : index
    %c0_0 = arith.constant 0 : index
    %0 = vector.load %arg0[%c0, %c0_0] : memref<8x3xf32, #tpu.memory_space<vmem>>, vector<8x3xf32>
    %c0_1 = arith.constant 0 : index
    %c0_2 = arith.constant 0 : index
    %1 = vector.load %arg1[%c0_1, %c0_2] : memref<3x100xf32, #tpu.memory_space<vmem>>, vector<3x100xf32>
    %cst = arith.constant dense<0.000000e+00> : vector<8x100xf32>
    %2 = tpu.matmul %0, %1, %cst {dimension_numbers = #tpu.dot_dimension_numbers<[1], [0], [0], [1], [0, 0, 1, 1], [], []>} : vector<8x3xf32>, vector<3x100xf32>, vector<8x100xf32> -> vector<8x100xf32>
    %c0_3 = arith.constant 0 : index
    %c0_4 = arith.constant 0 : index
    %3 = vector.load %arg2[%c0_3, %c0_4] : memref<1x100xf32, #tpu.memory_space<vmem>>, vector<1x100xf32>
    %4 = vector.broadcast %3 : vector<1x100xf32> to vector<8x100xf32>
    %5 = arith.addf %2, %4 : vector<8x100xf32>
    %cst_5 = arith.constant 0.000000e+00 : f32
    %6 = vector.broadcast %cst_5 : f32 to vector<8x100xf32>
    %7 = arith.cmpf oge, %5, %6 : vector<8x100xf32>
    %cst_6 = arith.constant 2.000000e-02 : f32
    %8 = vector.broadcast %cst_6 : f32 to vector<8x100xf32>
    %9 = arith.mulf %8, %5 : vector<8x100xf32>
    %10 = arith.select %7, %5, %9 : vector<8x100xi1>, vector<8x100xf32>
    %cst_7 = arith.constant dense<0.000000e+00> : vector<8xf32>
    %11 = vector.multi_reduction <add>, %10, %cst_7 [1] : vector<8x100xf32> to vector<8xf32>
    %12 = vector.shape_cast %11 : vector<8xf32> to vector<8x1xf32>
    %cst_8 = arith.constant 1.000000e+02 : f32
    %13 = vector.broadcast %cst_8 : f32 to vector<8x1xf32>
    %14 = arith.divf %12, %13 : vector<8x1xf32>
    %15 = vector.broadcast %14 : vector<8x1xf32> to vector<8x100xf32>
    %16 = arith.subf %10, %15 : vector<8x100xf32>
    %17 = vector.broadcast %14 : vector<8x1xf32> to vector<8x100xf32>
    %18 = arith.subf %10, %17 : vector<8x100xf32>
    %19 = arith.mulf %16, %18 : vector<8x100xf32>
    %cst_9 = arith.constant dense<0.000000e+00> : vector<8xf32>
    %20 = vector.multi_reduction <add>, %19, %cst_9 [1] : vector<8x100xf32> to vector<8xf32>
    %21 = vector.shape_cast %20 : vector<8xf32> to vector<8x1xf32>
    %cst_10 = arith.constant 1.000000e+02 : f32
    %22 = vector.broadcast %cst_10 : f32 to vector<8x1xf32>
    %23 = arith.divf %21, %22 : vector<8x1xf32>
    %24 = vector.broadcast %14 : vector<8x1xf32> to vector<8x100xf32>
    %25 = arith.subf %10, %24 : vector<8x100xf32>
    %cst_11 = arith.constant 9.99999974E-6 : f32
    %26 = vector.broadcast %cst_11 : f32 to vector<8x1xf32>
    %27 = arith.addf %23, %26 : vector<8x1xf32>
    %28 = math.rsqrt %27 : vector<8x1xf32>
    %29 = vector.broadcast %28 : vector<8x1xf32> to vector<8x100xf32>
    %30 = arith.mulf %25, %29 : vector<8x100xf32>
    %c0_12 = arith.constant 0 : index
    %c0_13 = arith.constant 0 : index
    %31 = vector.load %arg3[%c0_12, %c0_13] : memref<1x100xf32, #tpu.memory_space<vmem>>, vector<1x100xf32>
    %32 = vector.broadcast %31 : vector<1x100xf32> to vector<8x100xf32>
    %33 = arith.mulf %30, %32 : vector<8x100xf32>
    %c0_14 = arith.constant 0 : index
    %c0_15 = arith.constant 0 : index
    %34 = vector.load %arg4[%c0_14, %c0_15] : memref<1x100xf32, #tpu.memory_space<vmem>>, vector<1x100xf32>
    %35 = vector.broadcast %34 : vector<1x100xf32> to vector<8x100xf32>
    %36 = arith.addf %33, %35 : vector<8x100xf32>
    %c0_16 = arith.constant 0 : index
    %c0_17 = arith.constant 0 : index
    %37 = vector.load %arg5[%c0_16, %c0_17] : memref<100x300xf32, #tpu.memory_space<vmem>>, vector<100x300xf32>
    %cst_18 = arith.constant dense<0.000000e+00> : vector<8x300xf32>
    %38 = tpu.matmul %36, %37, %cst_18 {dimension_numbers = #tpu.dot_dimension_numbers<[1], [0], [0], [1], [0, 0, 1, 1], [], []>} : vector<8x100xf32>, vector<100x300xf32>, vector<8x300xf32> -> vector<8x300xf32>
    %c0_19 = arith.constant 0 : index
    %c0_20 = arith.constant 0 : index
    %39 = vector.load %arg6[%c0_19, %c0_20] : memref<1x300xf32, #tpu.memory_space<vmem>>, vector<1x300xf32>
    %40 = vector.broadcast %39 : vector<1x300xf32> to vector<8x300xf32>
    %41 = arith.addf %38, %40 : vector<8x300xf32>
    %cst_21 = arith.constant 0.000000e+00 : f32
    %42 = vector.broadcast %cst_21 : f32 to vector<8x300xf32>
    %43 = arith.cmpf oge, %41, %42 : vector<8x300xf32>
    %cst_22 = arith.constant 2.000000e-02 : f32
    %44 = vector.broadcast %cst_22 : f32 to vector<8x300xf32>
    %45 = arith.mulf %44, %41 : vector<8x300xf32>
    %46 = arith.select %43, %41, %45 : vector<8x300xi1>, vector<8x300xf32>
    %cst_23 = arith.constant dense<0.000000e+00> : vector<8xf32>
    %47 = vector.multi_reduction <add>, %46, %cst_23 [1] : vector<8x300xf32> to vector<8xf32>
    %48 = vector.shape_cast %47 : vector<8xf32> to vector<8x1xf32>
    %cst_24 = arith.constant 3.000000e+02 : f32
    %49 = vector.broadcast %cst_24 : f32 to vector<8x1xf32>
    %50 = arith.divf %48, %49 : vector<8x1xf32>
    %51 = vector.broadcast %50 : vector<8x1xf32> to vector<8x300xf32>
    %52 = arith.subf %46, %51 : vector<8x300xf32>
    %53 = vector.broadcast %50 : vector<8x1xf32> to vector<8x300xf32>
    %54 = arith.subf %46, %53 : vector<8x300xf32>
    %55 = arith.mulf %52, %54 : vector<8x300xf32>
    %cst_25 = arith.constant dense<0.000000e+00> : vector<8xf32>
    %56 = vector.multi_reduction <add>, %55, %cst_25 [1] : vector<8x300xf32> to vector<8xf32>
    %57 = vector.shape_cast %56 : vector<8xf32> to vector<8x1xf32>
    %cst_26 = arith.constant 3.000000e+02 : f32
    %58 = vector.broadcast %cst_26 : f32 to vector<8x1xf32>
    %59 = arith.divf %57, %58 : vector<8x1xf32>
    %60 = vector.broadcast %50 : vector<8x1xf32> to vector<8x300xf32>
    %61 = arith.subf %46, %60 : vector<8x300xf32>
    %cst_27 = arith.constant 9.99999974E-6 : f32
    %62 = vector.broadcast %cst_27 : f32 to vector<8x1xf32>
    %63 = arith.addf %59, %62 : vector<8x1xf32>
    %64 = math.rsqrt %63 : vector<8x1xf32>
    %65 = vector.broadcast %64 : vector<8x1xf32> to vector<8x300xf32>
    %66 = arith.mulf %61, %65 : vector<8x300xf32>
    %c0_28 = arith.constant 0 : index
    %c0_29 = arith.constant 0 : index
    %67 = vector.load %arg7[%c0_28, %c0_29] : memref<1x300xf32, #tpu.memory_space<vmem>>, vector<1x300xf32>
    %68 = vector.broadcast %67 : vector<1x300xf32> to vector<8x300xf32>
    %69 = arith.mulf %66, %68 : vector<8x300xf32>
    %c0_30 = arith.constant 0 : index
    %c0_31 = arith.constant 0 : index
    %70 = vector.load %arg8[%c0_30, %c0_31] : memref<1x300xf32, #tpu.memory_space<vmem>>, vector<1x300xf32>
    %71 = vector.broadcast %70 : vector<1x300xf32> to vector<8x300xf32>
    %72 = arith.addf %69, %71 : vector<8x300xf32>
    %c0_32 = arith.constant 0 : index
    %c0_33 = arith.constant 0 : index
    %73 = vector.load %arg9[%c0_32, %c0_33] : memref<300x1000xf32, #tpu.memory_space<vmem>>, vector<300x1000xf32>
    %cst_34 = arith.constant dense<0.000000e+00> : vector<8x1000xf32>
    %74 = tpu.matmul %72, %73, %cst_34 {dimension_numbers = #tpu.dot_dimension_numbers<[1], [0], [0], [1], [0, 0, 1, 1], [], []>} : vector<8x300xf32>, vector<300x1000xf32>, vector<8x1000xf32> -> vector<8x1000xf32>
    %c0_35 = arith.constant 0 : index
    %c0_36 = arith.constant 0 : index
    %75 = vector.load %arg10[%c0_35, %c0_36] : memref<1x1000xf32, #tpu.memory_space<vmem>>, vector<1x1000xf32>
    %76 = vector.broadcast %75 : vector<1x1000xf32> to vector<8x1000xf32>
    %77 = arith.addf %74, %76 : vector<8x1000xf32>
    %cst_37 = arith.constant 0.000000e+00 : f32
    %78 = vector.broadcast %cst_37 : f32 to vector<8x1000xf32>
    %79 = arith.cmpf oge, %77, %78 : vector<8x1000xf32>
    %cst_38 = arith.constant 2.000000e-02 : f32
    %80 = vector.broadcast %cst_38 : f32 to vector<8x1000xf32>
    %81 = arith.mulf %80, %77 : vector<8x1000xf32>
    %82 = arith.select %79, %77, %81 : vector<8x1000xi1>, vector<8x1000xf32>
    %cst_39 = arith.constant dense<0.000000e+00> : vector<8xf32>
    %83 = vector.multi_reduction <add>, %82, %cst_39 [1] : vector<8x1000xf32> to vector<8xf32>
    %84 = vector.shape_cast %83 : vector<8xf32> to vector<8x1xf32>
    %cst_40 = arith.constant 1.000000e+03 : f32
    %85 = vector.broadcast %cst_40 : f32 to vector<8x1xf32>
    %86 = arith.divf %84, %85 : vector<8x1xf32>
    %87 = vector.broadcast %86 : vector<8x1xf32> to vector<8x1000xf32>
    %88 = arith.subf %82, %87 : vector<8x1000xf32>
    %89 = vector.broadcast %86 : vector<8x1xf32> to vector<8x1000xf32>
    %90 = arith.subf %82, %89 : vector<8x1000xf32>
    %91 = arith.mulf %88, %90 : vector<8x1000xf32>
    %cst_41 = arith.constant dense<0.000000e+00> : vector<8xf32>
    %92 = vector.multi_reduction <add>, %91, %cst_41 [1] : vector<8x1000xf32> to vector<8xf32>
    %93 = vector.shape_cast %92 : vector<8xf32> to vector<8x1xf32>
    %cst_42 = arith.constant 1.000000e+03 : f32
    %94 = vector.broadcast %cst_42 : f32 to vector<8x1xf32>
    %95 = arith.divf %93, %94 : vector<8x1xf32>
    %96 = vector.broadcast %86 : vector<8x1xf32> to vector<8x1000xf32>
    %97 = arith.subf %82, %96 : vector<8x1000xf32>
    %cst_43 = arith.constant 9.99999974E-6 : f32
    %98 = vector.broadcast %cst_43 : f32 to vector<8x1xf32>
    %99 = arith.addf %95, %98 : vector<8x1xf32>
    %100 = math.rsqrt %99 : vector<8x1xf32>
    %101 = vector.broadcast %100 : vector<8x1xf32> to vector<8x1000xf32>
    %102 = arith.mulf %97, %101 : vector<8x1000xf32>
    %c0_44 = arith.constant 0 : index
    %c0_45 = arith.constant 0 : index
    %103 = vector.load %arg11[%c0_44, %c0_45] : memref<1x1000xf32, #tpu.memory_space<vmem>>, vector<1x1000xf32>
    %104 = vector.broadcast %103 : vector<1x1000xf32> to vector<8x1000xf32>
    %105 = arith.mulf %102, %104 : vector<8x1000xf32>
    %c0_46 = arith.constant 0 : index
    %c0_47 = arith.constant 0 : index
    %106 = vector.load %arg12[%c0_46, %c0_47] : memref<1x1000xf32, #tpu.memory_space<vmem>>, vector<1x1000xf32>
    %107 = vector.broadcast %106 : vector<1x1000xf32> to vector<8x1000xf32>
    %108 = arith.addf %105, %107 : vector<8x1000xf32>
    %109 = arith.truncf %108 : vector<8x1000xf32> to vector<8x1000xbf16>
    %c0_48 = arith.constant 0 : index
    %c0_49 = arith.constant 0 : index
    %110 = vector.load %arg13[%c0_48, %c0_49] : memref<8x1000xbf16, #tpu.memory_space<vmem>>, vector<8x1000xbf16>
    tpu.vector_store %arg13[%c0_48, %c0_49], %109 {strides = array<i32>} : memref<8x1000xbf16, #tpu.memory_space<vmem>>, vector<8x1000xbf16>,
    return
  }
}

</mosaic_0001>

<bundles_post_ra>
// kernel: tpu_custom_call.1
= control target key start
LH: loop header
LB: loop body
LE: loop exit
PB: predicated region body
PF: predicated region fallthrough
CT: control target
= control target key end

     0   :  { %18 = vsyncpa [#allocation3], 0  ;;  %s2515_s0 = inlined_call_operand.vmem [shape: f32[8,3], index: 0, kind: input, shape index: {}]   ;;  %s2516_s1 = inlined_call_operand.hbm [shape: f32[3,100], index: 1, kind: input, shape index: {}]   ;;  %s2517_s2 = inlined_call_operand.hbm [shape: f32[1,100], index: 2, kind: input, shape index: {}]   ;;  %s2518_s3 = inlined_call_operand.hbm [shape: f32[1,100], index: 3, kind: input, shape index: {}]   ;;  %s2519_s4 = inlined_call_operand.hbm [shape: f32[1,100], index: 4, kind: input, shape index: {}]   ;;  %s2520_s5 = inlined_call_operand.vmem [shape: f32[100,300], index: 5, kind: input, shape index: {}]   ;;  %s2521_s6 = inlined_call_operand.hbm [shape: f32[1,300], index: 6, kind: input, shape index: {}]   ;;  %s2522_s7 = inlined_call_operand.hbm [shape: f32[1,300], index: 7, kind: input, shape index: {}]   ;;  %s2523_s8 = inlined_call_operand.hbm [shape: f32[1,300], index: 8, kind: input, shape index: {}]   ;;  %s2524_s9 = inlined_call_operand.hbm [shape: f32[300,1000], index: 9, kind: input, shape index: {}]   ;;  %s2525_s10 = inlined_call_operand.hbm [shape: f32[1,1000], index: 10, kind: input, shape index: {}]   ;;  %s2526_s11 = inlined_call_operand.hbm [shape: f32[1,1000], index: 11, kind: input, shape index: {}]   ;;  %s2527_s12 = inlined_call_operand.hbm [shape: f32[1,1000], index: 12, kind: input, shape index: {}]   ;;  %s2528_s13 = inlined_call_operand.hbm [shape: bf16[8,1000], index: 13, kind: output, shape index: {}]  }
   0x1   :  { %19 = vsyncpa [#allocation6], 0 }
   0x2   :  { %20 = vsyncpa [#allocation9], 0 }
   0x3   :  { %21 = vsyncpa [#allocation12], 0 }
   0x4   :  { %22 = vsyncpa [#allocation15], 0 }
   0x5   :  { %23 = vsyncpa [#allocation18], 0 }
   0x6   :  { %24 = vsyncpa [#allocation4], 0  ;;  %s2108_s25 = smov [#allocation5]   ;;  %s2109_s27 = smov [#allocation8]  }
   0x7   :  { %s43_s26 = sshll.u32 %s2108_s25, 4  ;;  %s63_s28 = sshll.u32 %s2109_s27, 4  ;;  %s44_s26 = int_to_ptr.vmem [resolvable:$true] %s43_s26  ;;  %s64_s28 = int_to_ptr.vmem [resolvable:$true] %s63_s28 }
   0x8   :  { %s1862_s29 = scalar_lea.vmem %s44_s26, 16  ;;  %s1866_s30 = scalar_lea.vmem %s44_s26, 32 }
   0x9   :  { %p1863_p0 = scmp.ne.s32.totalorder %s44_s26, %s1862_s29  ;;  %p1867_p1 = scmp.lt.s32.totalorder %s44_s26, %s44_s26 }
   0xa   :  { %p1868_p2 = scmp.lt.s32.totalorder %s1866_s30, %s1862_s29 }
   0xc   :  { %p1869_p3 = por %p1868_p2, %p1867_p1 }
   0xe   :  { %p1870_p4 = pnand %p1869_p3, %p1863_p0 }
  0x10   :  { %1873 = shalt.err (!%p1870_p4)
}
  0x11   :  { %46 = dma.hbm_to_vmem [thread:$0]  %s2517_s2, 16, %s44_s26, [#allocation6]  }
  0x12   :  { %s1882_s16 = scalar_lea.vmem %s64_s28, 16  ;;  %s1886_s17 = scalar_lea.vmem %s64_s28, 32 }
  0x13   :  { %p1883_p5 = scmp.ne.s32.totalorder %s64_s28, %s1882_s16  ;;  %p1887_p6 = scmp.lt.s32.totalorder %s64_s28, %s64_s28 }
  0x14   :  { %p1888_p7 = scmp.lt.s32.totalorder %s1886_s17, %s1882_s16 }
  0x16   :  { %p1889_p8 = por %p1888_p7, %p1887_p6 }
  0x18   :  { %p1890_p9 = pnand %p1889_p8, %p1883_p5 }
  0x1a   :  { %1893 = shalt.err (!%p1890_p9)
}
  0x1b   :  { %66 = dma.hbm_to_vmem [thread:$0]  %s2519_s4, 16, %s64_s28, [#allocation9]  }
  0x1c   :  { %s2110_s20 = smov [#allocation11]   ;;  %s2111_s22 = smov [#allocation14]  }
  0x1d   :  { %s85_s21 = sshll.u32 %s2110_s20, 4  ;;  %s104_s23 = sshll.u32 %s2111_s22, 4  ;;  %s86_s21 = int_to_ptr.vmem [resolvable:$true] %s85_s21  ;;  %s105_s23 = int_to_ptr.vmem [resolvable:$true] %s104_s23 }
  0x1e   :  { %s1902_s24 = scalar_lea.vmem %s86_s21, 48  ;;  %s1906_s2 = scalar_lea.vmem %s86_s21, 64 }
  0x1f   :  { %p1903_p10 = scmp.ne.s32.totalorder %s86_s21, %s1902_s24  ;;  %p1907_p11 = scmp.lt.s32.totalorder %s86_s21, %s86_s21 }
  0x20   :  { %p1908_p12 = scmp.lt.s32.totalorder %s1906_s2, %s1902_s24 }
  0x22   :  { %p1909_p13 = por %p1908_p12, %p1907_p11 }
  0x24   :  { %p1910_p0 = pnand %p1909_p13, %p1903_p10 }
  0x26   :  { %1913 = shalt.err (!%p1910_p0)
}
  0x27   :  { %88 = dma.hbm_to_vmem [thread:$0]  %s2522_s7, 48, %s86_s21, [#allocation12]  }
  0x28   :  { %s1922_s27 = scalar_lea.vmem %s105_s23, 38912  ;;  %p1927_p2 = scmp.lt.s32.totalorder %s105_s23, %s105_s23 }
  0x29   :  { %p1923_p1 = scmp.ne.s32.totalorder %s105_s23, %s1922_s27  ;;  %p1928_p3 = scmp.lt.s32.totalorder %s1922_s27, %s1922_s27 }
  0x2b   :  { %p1929_p4 = por %p1928_p3, %p1927_p2 }
  0x2d   :  { %p1930_p5 = pnand %p1929_p4, %p1923_p1 }
  0x2f   :  { %1933 = shalt.err (!%p1930_p5)
}
  0x30   :  { %s2112_s4 = smov 1024   ;;  %s2113_s28 = smov 64  }
  0x31   :  { %110 = dma.hbm_to_vmem [thread:$0]  %s2524_s9, 38912, %s105_s23, [#allocation15], %s2112_s4, %s2112_s4, %s2113_s28  }
  0x32   :  { %s2114_s14 = smov [#allocation17]   ;;  %s2115_s16 = smov [#allocation2]  }
  0x33   :  { %s127_s15 = sshll.u32 %s2114_s14, 4  ;;  %s33_s17 = sshll.u32 %s2115_s16, 4  ;;  %s128_s15 = int_to_ptr.vmem [resolvable:$true] %s127_s15  ;;  %s34_s17 = int_to_ptr.vmem [resolvable:$true] %s33_s17 }
  0x34   :  { %s1942_s7 = scalar_lea.vmem %s128_s15, 128  ;;  %p1947_p7 = scmp.lt.s32.totalorder %s128_s15, %s128_s15 }
  0x35   :  { %p1943_p6 = scmp.ne.s32.totalorder %s128_s15, %s1942_s7  ;;  %p1948_p8 = scmp.lt.s32.totalorder %s1942_s7, %s1942_s7 }
  0x37   :  { %p1949_p9 = por %p1948_p8, %p1947_p7 }
  0x39   :  { %p1950_p10 = pnand %p1949_p9, %p1943_p6 }
  0x3b   :  { %1953 = shalt.err (!%p1950_p10)
}
  0x3c   :  { %130 = dma.hbm_to_vmem [thread:$0]  %s2526_s11, 128, %s128_s15, [#allocation18]  }
  0x3d   :  { %s1962_s20 = scalar_lea.vmem %s34_s17, 64  ;;  %p1967_p12 = scmp.lt.s32.totalorder %s34_s17, %s34_s17 }
  0x3e   :  { %p1963_p11 = scmp.ne.s32.totalorder %s34_s17, %s1962_s20  ;;  %p1968_p13 = scmp.lt.s32.totalorder %s1962_s20, %s1962_s20 }
  0x40   :  { %p1969_p0 = por %p1968_p13, %p1967_p12 }
  0x42   :  { %p1970_p1 = pnand %p1969_p0, %p1963_p11 }
  0x44   :  { %1973 = shalt.err (!%p1970_p1)
}
  0x45   :  { %36 = dma.hbm_to_vmem [thread:$0]  %s2516_s1, 64, %s34_s17, [#allocation3]  }
  0x46   :  { %s2116_s22 = smov [#allocation7]   ;;  %s2117_s24 = smov [#allocation10]  }
  0x47   :  { %s53_s23 = sshll.u32 %s2116_s22, 4  ;;  %s75_s2 = sshll.u32 %s2117_s24, 4  ;;  %s54_s23 = int_to_ptr.vmem [resolvable:$true] %s53_s23  ;;  %s76_s2 = int_to_ptr.vmem [resolvable:$true] %s75_s2 }
  0x48   :  { %s1982_s25 = scalar_lea.vmem %s54_s23, 16  ;;  %s1986_s11 = scalar_lea.vmem %s54_s23, 32 }
  0x49   :  { %p1983_p2 = scmp.ne.s32.totalorder %s54_s23, %s1982_s25  ;;  %p1987_p3 = scmp.lt.s32.totalorder %s54_s23, %s54_s23 }
  0x4a   :  { %p1988_p4 = scmp.lt.s32.totalorder %s1986_s11, %s1982_s25 }
  0x4c   :  { %p1989_p5 = por %p1988_p4, %p1987_p3 }
  0x4e   :  { %p1990_p6 = pnand %p1989_p5, %p1983_p2 }
  0x50   :  { %1993 = shalt.err (!%p1990_p6)
}
  0x51   :  { %56 = dma.hbm_to_vmem [thread:$0]  %s2518_s3, 16, %s54_s23, [#allocation6]  }
  0x52   :  { %s2002_s4 = scalar_lea.vmem %s76_s2, 48  ;;  %s2006_s1 = scalar_lea.vmem %s76_s2, 64 }
  0x53   :  { %p2003_p7 = scmp.ne.s32.totalorder %s76_s2, %s2002_s4  ;;  %p2007_p8 = scmp.lt.s32.totalorder %s76_s2, %s76_s2 }
  0x54   :  { %p2008_p9 = scmp.lt.s32.totalorder %s2006_s1, %s2002_s4 }
  0x56   :  { %p2009_p10 = por %p2008_p9, %p2007_p8 }
  0x58   :  { %p2010_p11 = pnand %p2009_p10, %p2003_p7 }
  0x5a   :  { %2013 = shalt.err (!%p2010_p11)
}
  0x5b   :  { %78 = dma.hbm_to_vmem [thread:$0]  %s2521_s6, 48, %s76_s2, [#allocation9]  }
  0x5c   :  { %s2118_s30 = smov [#allocation13]   ;;  %s2119_s15 = smov [#allocation16]  }
  0x5d   :  { %s95_s14 = sshll.u32 %s2118_s30, 4  ;;  %s117_s16 = sshll.u32 %s2119_s15, 4  ;;  %s96_s14 = int_to_ptr.vmem [resolvable:$true] %s95_s14  ;;  %s118_s16 = int_to_ptr.vmem [resolvable:$true] %s117_s16 }
  0x5e   :  { %s2022_s17 = scalar_lea.vmem %s96_s14, 48  ;;  %s2026_s3 = scalar_lea.vmem %s96_s14, 64 }
  0x5f   :  { %p2023_p12 = scmp.ne.s32.totalorder %s96_s14, %s2022_s17  ;;  %p2027_p13 = scmp.lt.s32.totalorder %s96_s14, %s96_s14 }
  0x60   :  { %p2028_p0 = scmp.lt.s32.totalorder %s2026_s3, %s2022_s17 }
  0x62   :  { %p2029_p1 = por %p2028_p0, %p2027_p13 }
  0x64   :  { %p2030_p2 = pnand %p2029_p1, %p2023_p12 }
  0x66   :  { %2033 = shalt.err (!%p2030_p2)
}
  0x67   :  { %98 = dma.hbm_to_vmem [thread:$0]  %s2523_s8, 48, %s96_s14, [#allocation12]  }
  0x68   :  { %s2042_s19 = scalar_lea.vmem %s118_s16, 128  ;;  %p2047_p4 = scmp.lt.s32.totalorder %s118_s16, %s118_s16 }
  0x69   :  { %p2043_p3 = scmp.ne.s32.totalorder %s118_s16, %s2042_s19  ;;  %p2048_p5 = scmp.lt.s32.totalorder %s2042_s19, %s2042_s19 }
  0x6b   :  { %p2049_p6 = por %p2048_p5, %p2047_p4 }
  0x6d   :  { %p2050_p7 = pnand %p2049_p6, %p2043_p3 }
  0x6f   :  { %2053 = shalt.err (!%p2050_p7)
}
  0x70   :  { %120 = dma.hbm_to_vmem [thread:$0]  %s2525_s10, 128, %s118_s16, [#allocation15]  }
  0x71   :  { %s2120_s9 = smov [#allocation19]  }
  0x72   :  { %s137_s21 = sshll.u32 %s2120_s9, 4  ;;  %s138_s21 = int_to_ptr.vmem [resolvable:$true] %s137_s21 }
  0x73   :  { %s2062_s22 = scalar_lea.vmem %s138_s21, 128  ;;  %p2067_p9 = scmp.lt.s32.totalorder %s138_s21, %s138_s21 }
  0x74   :  { %p2063_p8 = scmp.ne.s32.totalorder %s138_s21, %s2062_s22  ;;  %p2068_p10 = scmp.lt.s32.totalorder %s2062_s22, %s2062_s22 }
  0x76   :  { %p2069_p11 = por %p2068_p10, %p2067_p9 }
  0x78   :  { %p2070_p12 = pnand %p2069_p11, %p2063_p8 }
  0x7a   :  { %2073 = shalt.err (!%p2070_p12)
}
  0x7b   :  { %140 = dma.hbm_to_vmem [thread:$0]  %s2527_s12, 128, %s138_s21, [#allocation18]  }
  0x7c   :  { %2094 = dma.done.wait [#allocation3], 64  }
  0x7d   :  { %2095 = vsyncadd [#allocation3], 4294967232 }
  0x7e   :  { %2096 = dma.done.wait [#allocation6], 32  }
  0x7f   :  { %2097 = vsyncadd [#allocation6], 4294967264 }
  0x80   :  { %2098 = dma.done.wait [#allocation9], 64  }
  0x81   :  { %2099 = vsyncadd [#allocation9], 4294967232 }
  0x82   :  { %2100 = dma.done.wait [#allocation12], 96  }
  0x83   :  { %2101 = vsyncadd [#allocation12], 4294967200 }
  0x84   :  { %2102 = dma.done.wait [#allocation15], 39040  }
  0x85   :  { %2103 = vsyncadd [#allocation15], 4294928256 }
  0x86   :  { %2104 = dma.done.wait [#allocation18], 256  }
  0x87   :  { %2105 = vsyncadd [#allocation18], 4294967040  ;;  %v2121_v0 = vmov 0.0   ;;  %vm2122_vm0 = vmmov 0   ;;  %vm187_vm1 = vcmask 1042432   ;;  %vm183_vm2 = vcmask 23552  }
  0x88   :  { %1798 = vmatprep.subr.mxu0 %v2121_v0  ;;  %1800 = vmatprep.mubr.msk.f32.mxu0 %vm2122_vm0, %v2121_v0  ;;  %v175_v1 = vld [vmem:[#allocation2] sm:$0x7]  ;;  %v1752_v3 = vld [vmem:[#allocation5] ss:$0 sm:$0xff]  ;;  %vm264_vm4 = vcmask 818176   ;;  %vm354_vm5 = vcmask 1043456   ;;  %v336_v63 = vlaneseq }
  0x89   :  { %428 = vmatprep.mubr.f32.mxu1 %v2121_v0  ;;  %v174_v2 = vld [vmem:[%s2515_s0] sm:$0xff]  ;;  %1799 = vmatpush3.msk.msra.mxu0 %vm187_vm1, %v175_v1  ;;  %v332_v10 = vld [vmem:[%s2520_s5 + $0x128] sm:$0xf]  ;;  %v333_v12 = vld [vmem:[%s2520_s5 + $0x130] sm:$0xf]  ;;  %vm515_vm9 = vcmask 359424  }
  0x8a   :  { %1801 = vmatmul.mubr.msk.f32.vlgmr.msra.gmra.mxu0 %vm183_vm2, %v174_v2  ;;  %1803 = vmatprep.subr.mxu0 %v2121_v0  ;;  %v331_v11 = vld [vmem:[%s2520_s5 + $0x120] sm:$0xf]  ;;  %v329_v18 = vld [vmem:[%s2520_s5 + $0x110] sm:$0xff]  ;;  %v328_v19 = vld [vmem:[%s2520_s5 + $0x108] sm:$0xff]  ;;  %v2377_v1 = vshrl.u32 %v336_v63, 7  ;;  %vm1550_vm2 = vcmask 850944  }
  0x8b   :  { %1829 = vmatprep.mubr.msk.f32.mxu0 %vm2122_vm0, %v2121_v0  ;;  %1757 = vmatprep.subr.msk.mxu1 %vm354_vm5, %v332_v10  ;;  %v330_v20 = vld [vmem:[%s2520_s5 + $0x118] sm:$0xff]  ;;  %v325_v22 = vld [vmem:[%s2520_s5 + $0xf0] sm:$0xff]  ;;  %v327_v23 = vld [vmem:[%s2520_s5 + $0x100] sm:$0xff] }
  0x8c   :  { %1758 = vmatpush1.msk.msra.mxu1 %vm354_vm5, %v331_v11  ;;  %1804 = vmatpush3.msk.msra.mxu0 %vm354_vm5, %v333_v12  ;;  %v326_v21 = vld [vmem:[%s2520_s5 + $0xf8] sm:$0xff]  ;;  %v323_v24 = vld [vmem:[%s2520_s5 + $0xe0] sm:$0xff]  ;;  %v324_v26 = vld [vmem:[%s2520_s5 + $0xe8] sm:$0xff]  ;;  %v2380_v2 = vsub.s32 0, %v2377_v1 }
  0x8d   :  { %1805 = vmatprep.subr.mxu0 %v2121_v0  ;;  %372 = vmatprep.subr.mxu1 %v329_v18  ;;  %v322_v25 = vld [vmem:[%s2520_s5 + $0xd8] sm:$0xff]  ;;  %v320_v27 = vld [vmem:[%s2520_s5 + $0xc8] sm:$0xff]  ;;  %v319_v28 = vld [vmem:[%s2520_s5 + $0xc0] sm:$0xff] }
  0x8e   :  { %373 = vmatpush1.msra.mxu1 %v328_v19  ;;  %1806 = vmatpush3.msra.mxu0 %v330_v20  ;;  %v321_v29 = vld [vmem:[%s2520_s5 + $0xd0] sm:$0xff]  ;;  %v316_v31 = vld [vmem:[%s2520_s5 + $0xa8] sm:$0xff]  ;;  %v318_v32 = vld [vmem:[%s2520_s5 + $0xb8] sm:$0xff] }
  0x8f   :  { %374 = vmatprep.subr.mxu1 %v326_v21  ;;  %1807 = vmatprep.subr.mxu0 %v2121_v0  ;;  %v317_v30 = vld [vmem:[%s2520_s5 + $0xb0] sm:$0xff]  ;;  %v314_v33 = vld [vmem:[%s2520_s5 + $0x98] sm:$0xff]  ;;  %v315_v35 = vld [vmem:[%s2520_s5 + $0xa0] sm:$0xff] }
  0x90   :  { %375 = vmatpush1.msra.mxu1 %v325_v22  ;;  %1808 = vmatpush3.msra.mxu0 %v327_v23  ;;  %v313_v34 = vld [vmem:[%s2520_s5 + $0x90] sm:$0xff]  ;;  %v311_v36 = vld [vmem:[%s2520_s5 + $0x80] sm:$0xff]  ;;  %v310_v37 = vld [vmem:[%s2520_s5 + $0x78] sm:$0xff] }
  0x91   :  { %376 = vmatprep.subr.mxu1 %v323_v24  ;;  %1809 = vmatprep.subr.mxu0 %v2121_v0  ;;  %v312_v38 = vld [vmem:[%s2520_s5 + $0x88] sm:$0xff]  ;;  %v307_v40 = vld [vmem:[%s2520_s5 + $0x60] sm:$0xff]  ;;  %v309_v41 = vld [vmem:[%s2520_s5 + $0x70] sm:$0xff] }
  0x92   :  { %377 = vmatpush1.msra.mxu1 %v322_v25  ;;  %1810 = vmatpush3.msra.mxu0 %v324_v26  ;;  %v308_v39 = vld [vmem:[%s2520_s5 + $0x68] sm:$0xff]  ;;  %v305_v42 = vld [vmem:[%s2520_s5 + $0x50] sm:$0xff]  ;;  %v306_v44 = vld [vmem:[%s2520_s5 + $0x58] sm:$0xff] }
  0x93   :  { %378 = vmatprep.subr.mxu1 %v320_v27  ;;  %1811 = vmatprep.subr.mxu0 %v2121_v0  ;;  %v304_v43 = vld [vmem:[%s2520_s5 + $0x48] sm:$0xff]  ;;  %v302_v45 = vld [vmem:[%s2520_s5 + $0x38] sm:$0xff]  ;;  %v301_v46 = vld [vmem:[%s2520_s5 + $0x30] sm:$0xff] }
  0x94   :  { %379 = vmatpush1.msra.mxu1 %v319_v28  ;;  %1812 = vmatpush3.msra.mxu0 %v321_v29  ;;  %v303_v47 = vld [vmem:[%s2520_s5 + $0x40] sm:$0xff]  ;;  %v298_v49 = vld [vmem:[%s2520_s5 + $0x18] sm:$0xff]  ;;  %v300_v50 = vld [vmem:[%s2520_s5 + $0x28] sm:$0xff] }
  0x95   :  { %380 = vmatprep.subr.mxu1 %v317_v30  ;;  %1813 = vmatprep.subr.mxu0 %v2121_v0  ;;  %v299_v48 = vld [vmem:[%s2520_s5 + $0x20] sm:$0xff]  ;;  %v296_v51 = vld [vmem:[%s2520_s5 + $0x8] sm:$0xff]  ;;  %v297_v53 = vld [vmem:[%s2520_s5 + $0x10] sm:$0xff] }
  0x96   :  { %381 = vmatpush1.msra.mxu1 %v316_v31  ;;  %1814 = vmatpush3.msra.mxu0 %v318_v32  ;;  %v295_v52 = vld [vmem:[%s2520_s5] sm:$0xff]  ;;  %v1756_v60 = vld [vmem:[#allocation8] ss:$0 sm:$0xff]  ;;  %v699_v26 = vld [vmem:[#allocation14 + $0x3c0] sm:$0xff]  ;;  %s2123_s5 = smov [#allocation20]  }
  0x97   :  { %382 = vmatprep.subr.mxu1 %v314_v33  ;;  %1815 = vmatprep.subr.mxu0 %v2121_v0  ;;  %v1755_v58 = vld [vmem:[#allocation7] ss:$0 sm:$0xff]  ;;  %v700_v25 = vld [vmem:[#allocation14 + $0x3c8] sm:$0xff]  ;;  %v691_v28 = vld [vmem:[#allocation14 + $0x380] sm:$0xff]  ;;  %s1738_s6 = sshll.u32 %s2123_s5, 4  ;;  %s1739_s6 = int_to_ptr.vmem [resolvable:$true] %s1738_s6 }
  0x98   :  { %383 = vmatpush1.msra.mxu1 %v313_v34  ;;  %1816 = vmatpush3.msra.mxu0 %v315_v35  ;;  %v692_v27 = vld [vmem:[#allocation14 + $0x388] sm:$0xff]  ;;  %v683_v30 = vld [vmem:[#allocation14 + $0x340] sm:$0xff]  ;;  %s2074_s20 = scalar_lea.vmem %s1739_s6, 512  ;;  %p2079_p0 = scmp.lt.s32.totalorder %s1739_s6, %s1739_s6 }
  0x99   :  { %384 = vmatprep.subr.mxu1 %v311_v36  ;;  %1817 = vmatprep.subr.mxu0 %v2121_v0  ;;  %v684_v29 = vld [vmem:[#allocation14 + $0x348] sm:$0xff]  ;;  %v675_v32 = vld [vmem:[#allocation14 + $0x300] sm:$0xff]  ;;  %p2075_p13 = scmp.ne.s32.totalorder %s1739_s6, %s2074_s20  ;;  %p2080_p1 = scmp.lt.s32.totalorder %s2074_s20, %s2074_s20 }
  0x9a   :  { %385 = vmatpush1.msra.mxu1 %v310_v37  ;;  %1818 = vmatpush3.msra.mxu0 %v312_v38  ;;  %v676_v31 = vld [vmem:[#allocation14 + $0x308] sm:$0xff]  ;;  %v667_v34 = vld [vmem:[#allocation14 + $0x2c0] sm:$0xff] }
  0x9b   :  { %386 = vmatprep.subr.mxu1 %v308_v39  ;;  %1819 = vmatprep.subr.mxu0 %v2121_v0  ;;  %v668_v33 = vld [vmem:[#allocation14 + $0x2c8] sm:$0xff]  ;;  %v659_v36 = vld [vmem:[#allocation14 + $0x280] sm:$0xff]  ;;  %p2081_p2 = por %p2080_p1, %p2079_p0 }
  0x9c   :  { %387 = vmatpush1.msra.mxu1 %v307_v40  ;;  %1820 = vmatpush3.msra.mxu0 %v309_v41  ;;  %v660_v35 = vld [vmem:[#allocation14 + $0x288] sm:$0xff]  ;;  %v651_v38 = vld [vmem:[#allocation14 + $0x240] sm:$0xff] }
  0x9d   :  { %388 = vmatprep.subr.mxu1 %v305_v42  ;;  %1821 = vmatprep.subr.mxu0 %v2121_v0  ;;  %v652_v37 = vld [vmem:[#allocation14 + $0x248] sm:$0xff]  ;;  %v643_v40 = vld [vmem:[#allocation14 + $0x200] sm:$0xff]  ;;  %p2082_p3 = pnand %p2081_p2, %p2075_p13 }
  0x9e   :  { %389 = vmatpush1.msra.mxu1 %v304_v43  ;;  %1822 = vmatpush3.msra.mxu0 %v306_v44  ;;  %v644_v39 = vld [vmem:[#allocation14 + $0x208] sm:$0xff]  ;;  %v635_v42 = vld [vmem:[#allocation14 + $0x1c0] sm:$0xff] }
  0x9f   :  { %390 = vmatprep.subr.mxu1 %v302_v45  ;;  %1823 = vmatprep.subr.mxu0 %v2121_v0  ;;  %v636_v41 = vld [vmem:[#allocation14 + $0x1c8] sm:$0xff]  ;;  %v627_v44 = vld [vmem:[#allocation14 + $0x180] sm:$0xff] }
  0xa0   :  { %391 = vmatpush1.msra.mxu1 %v301_v46  ;;  %1824 = vmatpush3.msra.mxu0 %v303_v47  ;;  %v628_v43 = vld [vmem:[#allocation14 + $0x188] sm:$0xff]  ;;  %v619_v46 = vld [vmem:[#allocation14 + $0x140] sm:$0xff] }
  0xa1   :  { %392 = vmatprep.subr.mxu1 %v299_v48  ;;  %1825 = vmatprep.subr.mxu0 %v2121_v0  ;;  %v620_v45 = vld [vmem:[#allocation14 + $0x148] sm:$0xff]  ;;  %v611_v48 = vld [vmem:[#allocation14 + $0x100] sm:$0xff] }
  0xa2   :  { %393 = vmatpush1.msra.mxu1 %v298_v49  ;;  %1826 = vmatpush3.msra.mxu0 %v300_v50  ;;  %v612_v47 = vld [vmem:[#allocation14 + $0x108] sm:$0xff]  ;;  %v603_v50 = vld [vmem:[#allocation14 + $0xc0] sm:$0xff] }
  0xa3   :  { %394 = vmatprep.subr.mxu1 %v296_v51  ;;  %1827 = vmatprep.subr.mxu0 %v2121_v0  ;;  %v604_v49 = vld [vmem:[#allocation14 + $0xc8] sm:$0xff] }
  0xa4   :  { %395 = vmatpush1.msra.mxu1 %v295_v52  ;;  %1828 = vmatpush3.msra.mxu0 %v297_v53  ;;  %v596_v51 = vld [vmem:[#allocation14 + $0x88] sm:$0xff]  ;;  %v595_v52 = vld [vmem:[#allocation14 + $0x80] sm:$0xff] }
  0xa5   :  { %952 = vmatprep.subr.mxu1 %v700_v25  ;;  %v588_v53 = vld [vmem:[#allocation14 + $0x48] sm:$0xff] }
  0xa6   :  { %v804_v63 = vld [vmem:[#allocation14 + $0x708] sm:$0xff] }
  0xa7   :  { %v764_v25 = vld [vmem:[#allocation14 + $0x5c8] sm:$0xff] }
 0x14a   :  { %v257_v4 = vpop.f32.mrf.mxu0 }
 0x14b   :  { %v258_v5 = vadd.f32 %v1752_v3, %v257_v4  ;;  %v2383_v3 = vsub.s32 2, %v2377_v1  ;;  %v334_v4 = vld [vmem:[#allocation10] sm:$0x7] }
 0x14c   :  { %v1802_v6 = vpop.f32.mrf.mxu0 }
 0x14d   :  { %v262_v7 = vmul.f32 0.02, %v258_v5  ;;  %vm261_vm3 = vcmp.ge.f32.partialorder %v258_v5, 0.0  ;;  %v339_v6 = vrot.slane %v334_v4, %v2380_v2 }
 0x14f   :  { %v263_v8 = vsel %vm261_vm3, %v258_v5, %v262_v7  ;;  %v2386_v5 = vsub.s32 1, %v2377_v1  ;;  %v347_v7 = vrot.slane %v334_v4, %v2383_v3  ;;  %vm1729_vm3 = vcmask 850948  }
 0x150   :  { %v265_v9 = vsel %vm264_vm4, %v263_v8, 0.0 }
 0x151   :  { %266 = vadd.xlane.f32.xlu0 %v265_v9 }
 0x1da   :  { %v267_v13 = vpop.xlane.xlu0 %266 }
 0x1db   :  { %v269_v14 = vmul.f32 0.01, %v267_v13 }
 0x1dd   :  { %v2249_v15 = vsub.f32 %v263_v8, %v269_v14  ;;  %v343_v8 = vrot.slane %v334_v4, %v2386_v5  ;;  %v803_v4 = vld [vmem:[#allocation14 + $0x700] sm:$0xff] }
 0x1df   :  { %v271_v16 = vmul.f32 %v2249_v15, %v2249_v15 }
 0x1e1   :  { %v272_v17 = vsel %vm264_vm4, %v271_v16, 0.0 }
 0x1e2   :  { %273 = vadd.xlane.f32.xlu0 %v272_v17 }
 0x26b   :  { %v274_v54 = vpop.xlane.xlu0 %273 }
 0x26c   :  { %v275_v55 = vmul.f32 0.01, %v274_v54  ;;  %v587_v54 = vld [vmem:[#allocation14 + $0x40] sm:$0xff] }
 0x26e   :  { %v276_v56 = vadd.f32 1e-05, %v275_v55  ;;  %v580_v55 = vld [vmem:[#allocation14 + $0x8] sm:$0xff] }
 0x270   :  { %1848 = vrsqrt.f32 %v276_v56  ;;  %v579_v56 = vld [vmem:[#allocation14] sm:$0xff] }
 0x27d   :  { %v1849_v57 = vpop.eup %1848 }
 0x27e   :  { %v278_v59 = vmul.f32 %v1849_v57, %v2249_v15  ;;  %v828_v57 = vld [vmem:[#allocation14 + $0x7c8] sm:$0xff] }
 0x280   :  { %v286_v61 = vmul.f32 %v1755_v58, %v278_v59  ;;  %v827_v58 = vld [vmem:[#allocation14 + $0x7c0] sm:$0xff]  ;;  %v820_v59 = vld [vmem:[#allocation14 + $0x788] sm:$0xff] }
 0x282   :  { %v294_v62 = vadd.f32 %v1756_v60, %v286_v61  ;;  %v819_v60 = vld [vmem:[#allocation14 + $0x780] sm:$0xff]  ;;  %v812_v61 = vld [vmem:[#allocation14 + $0x748] sm:$0xff] }
 0x284   :  { %1759 = vmatmul.mubr.msk.f32.vlgmr.msra.gmra.mxu1 %vm264_vm4, %v294_v62  ;;  %1830 = vmatmul.mubr.msk.f32.vlgmr.msra.gmra.mxu0 %vm264_vm4, %v294_v62  ;;  %v811_v62 = vld [vmem:[#allocation14 + $0x740] sm:$0xff]  ;;  %vm1730_vm4 = vmor %vm1729_vm3, %vm354_vm5 }
 0x285   :  { %1087 = vmatprep.mubr.f32.mxu0 %v2121_v0  ;;  %953 = vmatpush1.msra.mxu1 %v699_v26  ;;  %v876_v26 = vld [vmem:[#allocation14 + $0x948] sm:$0xf] }
 0x286   :  { %954 = vmatprep.subr.mxu1 %v692_v27  ;;  %v763_v27 = vld [vmem:[#allocation14 + $0x5c0] sm:$0xff]  ;;  %1762 = vmatprep.subr.msk.mxu0 %vm354_vm5, %v876_v26  ;;  %v678_v26 = vld [vmem:[#allocation14 + $0x318] sm:$0xff] }
 0x287   :  { %955 = vmatpush1.msra.mxu1 %v691_v28  ;;  %v875_v28 = vld [vmem:[#allocation14 + $0x940] sm:$0xf] }
 0x288   :  { %956 = vmatprep.subr.mxu1 %v684_v29  ;;  %v756_v29 = vld [vmem:[#allocation14 + $0x588] sm:$0xff]  ;;  %1763 = vmatpush1.msk.msra.mxu0 %vm354_vm5, %v875_v28  ;;  %v677_v28 = vld [vmem:[#allocation14 + $0x310] sm:$0xff] }
 0x289   :  { %957 = vmatpush1.msra.mxu1 %v683_v30  ;;  %v868_v30 = vld [vmem:[#allocation14 + $0x908] sm:$0xff] }
 0x28a   :  { %958 = vmatprep.subr.mxu1 %v676_v31  ;;  %v867_v31 = vld [vmem:[#allocation14 + $0x900] sm:$0xff]  ;;  %1045 = vmatprep.subr.mxu0 %v868_v30  ;;  %v670_v30 = vld [vmem:[#allocation14 + $0x2d8] sm:$0xff] }
 0x28b   :  { %959 = vmatpush1.msra.mxu1 %v675_v32  ;;  %v755_v32 = vld [vmem:[#allocation14 + $0x580] sm:$0xff]  ;;  %1046 = vmatpush1.msra.mxu0 %v867_v31  ;;  %v853_v31 = vld [vmem:[#allocation14 + $0x890] sm:$0xff] }
 0x28c   :  { %960 = vmatprep.subr.mxu1 %v668_v33  ;;  %v860_v33 = vld [vmem:[#allocation14 + $0x8c8] sm:$0xff] }
 0x28d   :  { %961 = vmatpush1.msra.mxu1 %v667_v34  ;;  %v748_v34 = vld [vmem:[#allocation14 + $0x548] sm:$0xff]  ;;  %1047 = vmatprep.subr.mxu0 %v860_v33  ;;  %v846_v33 = vld [vmem:[#allocation14 + $0x858] sm:$0xff] }
 0x28e   :  { %962 = vmatprep.subr.mxu1 %v660_v35  ;;  %v859_v35 = vld [vmem:[#allocation14 + $0x8c0] sm:$0xff] }
 0x28f   :  { %963 = vmatpush1.msra.mxu1 %v659_v36  ;;  %v852_v36 = vld [vmem:[#allocation14 + $0x888] sm:$0xff]  ;;  %1048 = vmatpush1.msra.mxu0 %v859_v35  ;;  %v845_v35 = vld [vmem:[#allocation14 + $0x850] sm:$0xff] }
 0x290   :  { %964 = vmatprep.subr.mxu1 %v652_v37  ;;  %v747_v37 = vld [vmem:[#allocation14 + $0x540] sm:$0xff]  ;;  %1049 = vmatprep.subr.mxu0 %v852_v36  ;;  %v661_v36 = vld [vmem:[#allocation14 + $0x290] sm:$0xff] }
 0x291   :  { %965 = vmatpush1.msra.mxu1 %v651_v38  ;;  %v851_v38 = vld [vmem:[#allocation14 + $0x880] sm:$0xff] }
 0x292   :  { %966 = vmatprep.subr.mxu1 %v644_v39  ;;  %v740_v39 = vld [vmem:[#allocation14 + $0x508] sm:$0xff]  ;;  %1050 = vmatpush1.msra.mxu0 %v851_v38  ;;  %v654_v38 = vld [vmem:[#allocation14 + $0x258] sm:$0xff] }
 0x293   :  { %967 = vmatpush1.msra.mxu1 %v643_v40  ;;  %v844_v40 = vld [vmem:[#allocation14 + $0x848] sm:$0xff] }
 0x294   :  { %968 = vmatprep.subr.mxu1 %v636_v41  ;;  %v739_v41 = vld [vmem:[#allocation14 + $0x500] sm:$0xff]  ;;  %1051 = vmatprep.subr.mxu0 %v844_v40  ;;  %v653_v40 = vld [vmem:[#allocation14 + $0x250] sm:$0xff] }
 0x295   :  { %969 = vmatpush1.msra.mxu1 %v635_v42  ;;  %v843_v42 = vld [vmem:[#allocation14 + $0x840] sm:$0xff] }
 0x296   :  { %970 = vmatprep.subr.mxu1 %v628_v43  ;;  %v732_v43 = vld [vmem:[#allocation14 + $0x4c8] sm:$0xff]  ;;  %1052 = vmatpush1.msra.mxu0 %v843_v42  ;;  %v646_v42 = vld [vmem:[#allocation14 + $0x218] sm:$0xff] }
 0x297   :  { %971 = vmatpush1.msra.mxu1 %v627_v44  ;;  %v836_v44 = vld [vmem:[#allocation14 + $0x808] sm:$0xff] }
 0x298   :  { %972 = vmatprep.subr.mxu1 %v620_v45  ;;  %v731_v45 = vld [vmem:[#allocation14 + $0x4c0] sm:$0xff]  ;;  %1053 = vmatprep.subr.mxu0 %v836_v44  ;;  %v645_v44 = vld [vmem:[#allocation14 + $0x210] sm:$0xff] }
 0x299   :  { %973 = vmatpush1.msra.mxu1 %v619_v46  ;;  %v835_v46 = vld [vmem:[#allocation14 + $0x800] sm:$0xff] }
 0x29a   :  { %974 = vmatprep.subr.mxu1 %v612_v47  ;;  %v724_v47 = vld [vmem:[#allocation14 + $0x488] sm:$0xff]  ;;  %1054 = vmatpush1.msra.mxu0 %v835_v46  ;;  %v638_v46 = vld [vmem:[#allocation14 + $0x1d8] sm:$0xff] }
 0x29b   :  { %975 = vmatpush1.msra.mxu1 %v611_v48  ;;  %v702_v48 = vld [vmem:[#allocation14 + $0x3d8] sm:$0xff] }
 0x29c   :  { %976 = vmatprep.subr.mxu1 %v604_v49  ;;  %v723_v49 = vld [vmem:[#allocation14 + $0x480] sm:$0xff]  ;;  %1094 = vmatprep.subr.mxu0 %v702_v48  ;;  %v637_v48 = vld [vmem:[#allocation14 + $0x1d0] sm:$0xff] }
 0x29d   :  { %977 = vmatpush1.msra.mxu1 %v603_v50  ;;  %v716_v50 = vld [vmem:[#allocation14 + $0x448] sm:$0xff] }
 0x29e   :  { %978 = vmatprep.subr.mxu1 %v596_v51  ;;  %v715_v51 = vld [vmem:[#allocation14 + $0x440] sm:$0xff] }
 0x29f   :  { %979 = vmatpush1.msra.mxu1 %v595_v52  ;;  %v708_v52 = vld [vmem:[#allocation14 + $0x408] sm:$0xff] }
 0x2a0   :  { %980 = vmatprep.subr.mxu1 %v588_v53  ;;  %v707_v53 = vld [vmem:[#allocation14 + $0x400] sm:$0xff] }
 0x2a1   :  { %981 = vmatpush1.msra.mxu1 %v587_v54  ;;  %v878_v54 = vld [vmem:[#allocation14 + $0x958] sm:$0xf] }
 0x2a2   :  { %982 = vmatprep.subr.mxu1 %v580_v55 }
 0x2a3   :  { %983 = vmatpush1.msra.mxu1 %v579_v56 }
 0x2a4   :  { %984 = vmatprep.subr.mxu1 %v828_v57 }
 0x2a5   :  { %985 = vmatpush2.msra.mxu1 %v827_v58  ;;  %v539_v58 = vld [vmem:[#allocation11] sm:$0x7] }
 0x2a6   :  { %986 = vmatprep.subr.mxu1 %v820_v59  ;;  %v559_v59 = vld [vmem:[#allocation13] sm:$0x7] }
 0x2a7   :  { %987 = vmatpush2.msra.mxu1 %v819_v60  ;;  %v548_v60 = vrot.slane %v539_v58, %v2386_v5 }
 0x2a8   :  { %988 = vmatprep.subr.mxu1 %v812_v61  ;;  %v552_v61 = vrot.slane %v539_v58, %v2383_v3 }
 0x2a9   :  { %989 = vmatpush2.msra.mxu1 %v811_v62  ;;  %v544_v62 = vrot.slane %v539_v58, %v2380_v2  ;;  %v614_v58 = vld [vmem:[#allocation14 + $0x118] sm:$0xff] }
 0x2aa   :  { %990 = vmatprep.subr.mxu1 %v804_v63 }
 0x2ab   :  { %991 = vmatpush2.msra.mxu1 %v803_v4  ;;  %v568_v4 = vrot.slane %v559_v59, %v2386_v5 }
 0x344   :  { %v430_v9 = vpop.f32.mrf.mxu1  ;;  %v501_v10 = vpop.f32.mrf.mxu0 }
 0x345   :  { %v431_v11 = vadd.f32 %v430_v9, %v339_v6  ;;  %v502_v12 = vadd.f32 %v501_v10, %v347_v7 }
 0x346   :  { %v432_v13 = vpop.f32.mrf.mxu1  ;;  %v1831_v14 = vpop.f32.mrf.mxu0 }
 0x347   :  { %v508_v15 = vmul.f32 0.02, %v431_v11  ;;  %v510_v16 = vmul.f32 0.02, %v502_v12  ;;  %v433_v17 = vadd.f32 %v432_v13, %v343_v8  ;;  %vm505_vm6 = vcmp.ge.f32.partialorder %v431_v11, 0.0 }
 0x348   :  { %vm507_vm7 = vcmp.ge.f32.partialorder %v502_v12, 0.0 }
 0x349   :  { %vm506_vm8 = vcmp.ge.f32.partialorder %v433_v17, 0.0  ;;  %v509_v18 = vmul.f32 0.02, %v433_v17  ;;  %v2391_v19 = vsel %vm507_vm7, %v502_v12, %v510_v16  ;;  %v2393_v20 = vsel %vm505_vm6, %v431_v11, %v508_v15 }
 0x34a   :  { %v516_v23 = vsel %vm515_vm9, %v2391_v19, 0.0 }
 0x34b   :  { %v2395_v21 = vsel %vm506_vm8, %v433_v17, %v509_v18  ;;  %v796_v17 = vld [vmem:[#allocation14 + $0x6c8] sm:$0xff]  ;;  %v795_v18 = vld [vmem:[#allocation14 + $0x6c0] sm:$0xff] }
 0x34c   :  { %v514_v22 = vadd.f32 %v2395_v21, %v2393_v20  ;;  %992 = vmatprep.subr.mxu1 %v796_v17 }
 0x34d   :  { %993 = vmatpush2.msra.mxu1 %v795_v18 }
 0x34e   :  { %v517_v24 = vadd.f32 %v516_v23, %v514_v22  ;;  %v779_v22 = vld [vmem:[#allocation14 + $0x640] sm:$0xff]  ;;  %v772_v23 = vld [vmem:[#allocation14 + $0x608] sm:$0xff] }
 0x350   :  { %518 = vadd.xlane.f32.xlu1 %v517_v24  ;;  %v771_v24 = vld [vmem:[#allocation14 + $0x600] sm:$0xff] }
 0x3d9   :  { %v519_v6 = vpop.xlane.xlu1 %518 }
 0x3da   :  { %v521_v7 = vmul.f32 0.0033333334, %v519_v6  ;;  %v572_v6 = vrot.slane %v559_v59, %v2383_v3 }
 0x3dc   :  { %v2402_v8 = vsub.f32 %v2393_v20, %v521_v7  ;;  %v2405_v9 = vsub.f32 %v2395_v21, %v521_v7  ;;  %v2408_v10 = vsub.f32 %v2391_v19, %v521_v7  ;;  %v788_v19 = vld [vmem:[#allocation14 + $0x688] sm:$0xff]  ;;  %v787_v20 = vld [vmem:[#allocation14 + $0x680] sm:$0xff] }
 0x3dd   :  { %994 = vmatprep.subr.mxu1 %v788_v19  ;;  %v780_v21 = vld [vmem:[#allocation14 + $0x648] sm:$0xff]  ;;  %v701_v19 = vld [vmem:[#allocation14 + $0x3d0] sm:$0xff] }
 0x3de   :  { %v525_v11 = vmul.f32 %v2402_v8, %v2402_v8  ;;  %v526_v12 = vmul.f32 %v2405_v9, %v2405_v9  ;;  %v527_v13 = vmul.f32 %v2408_v10, %v2408_v10  ;;  %995 = vmatpush2.msra.mxu1 %v787_v20 }
 0x3df   :  { %996 = vmatprep.subr.mxu1 %v780_v21  ;;  %v694_v21 = vld [vmem:[#allocation14 + $0x398] sm:$0xff] }
 0x3e0   :  { %v528_v14 = vadd.f32 %v526_v12, %v525_v11  ;;  %v529_v15 = vsel %vm515_vm9, %v527_v13, 0.0  ;;  %997 = vmatpush2.msra.mxu1 %v779_v22  ;;  %v564_v13 = vrot.slane %v559_v59, %v2380_v2  ;;  %v686_v22 = vld [vmem:[#allocation14 + $0x358] sm:$0xff]  ;;  %v671_v59 = vld [vmem:[#allocation14 + $0x2e0] sm:$0xff] }
 0x3e1   :  { %998 = vmatprep.subr.mxu1 %v772_v23  ;;  %v869_v23 = vld [vmem:[#allocation14 + $0x910] sm:$0xff] }
 0x3e2   :  { %v530_v16 = vadd.f32 %v529_v15, %v528_v14  ;;  %999 = vmatpush2.msra.mxu1 %v771_v24  ;;  %v685_v24 = vld [vmem:[#allocation14 + $0x350] sm:$0xff] }
 0x3e3   :  { %1000 = vmatprep.subr.mxu1 %v764_v25  ;;  %v862_v25 = vld [vmem:[#allocation14 + $0x8d8] sm:$0xff] }
 0x3e4   :  { %531 = vadd.xlane.f32.xlu1 %v530_v16  ;;  %1001 = vmatpush2.msra.mxu1 %v763_v27  ;;  %v861_v27 = vld [vmem:[#allocation14 + $0x8d0] sm:$0xff] }
 0x3e5   :  { %1002 = vmatprep.subr.mxu1 %v756_v29  ;;  %v854_v29 = vld [vmem:[#allocation14 + $0x898] sm:$0xff] }
 0x3e6   :  { %1003 = vmatpush2.msra.mxu1 %v755_v32  ;;  %v669_v32 = vld [vmem:[#allocation14 + $0x2d0] sm:$0xff] }
 0x3e7   :  { %1004 = vmatprep.subr.mxu1 %v748_v34  ;;  %v662_v34 = vld [vmem:[#allocation14 + $0x298] sm:$0xff] }
 0x3e8   :  { %1005 = vmatpush2.msra.mxu1 %v747_v37  ;;  %v838_v37 = vld [vmem:[#allocation14 + $0x818] sm:$0xff] }
 0x3e9   :  { %1006 = vmatprep.subr.mxu1 %v740_v39  ;;  %v837_v39 = vld [vmem:[#allocation14 + $0x810] sm:$0xff] }
 0x3ea   :  { %1007 = vmatpush2.msra.mxu1 %v739_v41  ;;  %v704_v41 = vld [vmem:[#allocation14 + $0x3e8] sm:$0xff] }
 0x3eb   :  { %1008 = vmatprep.subr.mxu1 %v732_v43  ;;  %v703_v43 = vld [vmem:[#allocation14 + $0x3e0] sm:$0xff] }
 0x3ec   :  { %1009 = vmatpush2.msra.mxu1 %v731_v45  ;;  %v696_v45 = vld [vmem:[#allocation14 + $0x3a8] sm:$0xff] }
 0x3ed   :  { %1010 = vmatprep.subr.mxu1 %v724_v47  ;;  %v695_v47 = vld [vmem:[#allocation14 + $0x3a0] sm:$0xff] }
 0x3ee   :  { %1011 = vmatpush2.msra.mxu1 %v723_v49  ;;  %v688_v49 = vld [vmem:[#allocation14 + $0x368] sm:$0xff] }
 0x3ef   :  { %1012 = vmatprep.subr.mxu1 %v716_v50  ;;  %v630_v50 = vld [vmem:[#allocation14 + $0x198] sm:$0xff] }
 0x3f0   :  { %1013 = vmatpush2.msra.mxu1 %v715_v51  ;;  %v687_v51 = vld [vmem:[#allocation14 + $0x360] sm:$0xff] }
 0x3f1   :  { %1014 = vmatprep.subr.mxu1 %v708_v52  ;;  %v629_v52 = vld [vmem:[#allocation14 + $0x190] sm:$0xff] }
 0x3f2   :  { %1015 = vmatpush2.msra.mxu1 %v707_v53  ;;  %v680_v53 = vld [vmem:[#allocation14 + $0x328] sm:$0xff] }
 0x3f3   :  { %1765 = vmatprep.subr.msk.mxu1 %vm354_vm5, %v878_v54  ;;  %v622_v54 = vld [vmem:[#allocation14 + $0x158] sm:$0xff] }
 0x46d   :  { %v532_v55 = vpop.xlane.xlu1 %531 }
 0x46e   :  { %v533_v56 = vmul.f32 0.0033333334, %v532_v55  ;;  %v679_v55 = vld [vmem:[#allocation14 + $0x320] sm:$0xff] }
 0x470   :  { %v534_v57 = vadd.f32 1e-05, %v533_v56  ;;  %v621_v56 = vld [vmem:[#allocation14 + $0x150] sm:$0xff] }
 0x472   :  { %1850 = vrsqrt.f32 %v534_v57  ;;  %v672_v57 = vld [vmem:[#allocation14 + $0x2e8] sm:$0xff] }
 0x47f   :  { %v1851_v63 = vpop.eup %1850 }
 0x480   :  { %v537_v7 = vmul.f32 %v1851_v63, %v2405_v9  ;;  %v538_v11 = vmul.f32 %v1851_v63, %v2408_v10  ;;  %v536_v12 = vmul.f32 %v1851_v63, %v2402_v8  ;;  %v877_v9 = vld [vmem:[#allocation14 + $0x950] sm:$0xf]  ;;  %v870_v10 = vld [vmem:[#allocation14 + $0x918] sm:$0xff]  ;;  %v663_v63 = vld [vmem:[#allocation14 + $0x2a0] sm:$0xff] }
 0x481   :  { %v693_v8 = vld [vmem:[#allocation14 + $0x390] sm:$0xff] }
 0x482   :  { %v557_v14 = vmul.f32 %v548_v60, %v537_v7  ;;  %v558_v15 = vmul.f32 %v552_v61, %v538_v11  ;;  %v556_v16 = vmul.f32 %v544_v62, %v536_v12  ;;  %v613_v60 = vld [vmem:[#allocation14 + $0x110] sm:$0xff]  ;;  %v664_v61 = vld [vmem:[#allocation14 + $0x2a8] sm:$0xff]  ;;  %v606_v62 = vld [vmem:[#allocation14 + $0xd8] sm:$0xff] }
 0x483   :  { %v598_v7 = vld [vmem:[#allocation14 + $0x98] sm:$0xff]  ;;  %v655_v11 = vld [vmem:[#allocation14 + $0x260] sm:$0xff]  ;;  %v597_v12 = vld [vmem:[#allocation14 + $0x90] sm:$0xff] }
 0x484   :  { %v2429_v17 = vadd.f32 %v568_v4, %v557_v14  ;;  %v2431_v18 = vadd.f32 %v572_v6, %v558_v15  ;;  %v2433_v20 = vadd.f32 %v564_v13, %v556_v16  ;;  %v605_v4 = vld [vmem:[#allocation14 + $0xd0] sm:$0xff]  ;;  %v656_v6 = vld [vmem:[#allocation14 + $0x268] sm:$0xff]  ;;  %v590_v14 = vld [vmem:[#allocation14 + $0x58] sm:$0xff] }
 0x485   :  { %v648_v13 = vld [vmem:[#allocation14 + $0x228] sm:$0xff]  ;;  %v647_v15 = vld [vmem:[#allocation14 + $0x220] sm:$0xff]  ;;  %v589_v16 = vld [vmem:[#allocation14 + $0x50] sm:$0xff] }
 0x486   :  { %1016 = vmatprep.mubr.f32.mxu1 %v2429_v17  ;;  %1764 = vmatmul.mubr.msk.f32.vlgmr.msra.gmra.mxu0 %vm515_vm9, %v2431_v18 }
 0x487   :  { %1095 = vmatpush1.msra.mxu0 %v701_v19  ;;  %1017 = vmatmul.mubr.f32.vlgmr.msra.gmra.mxu1 %v2433_v20  ;;  %v640_v19 = vld [vmem:[#allocation14 + $0x1e8] sm:$0xff] }
 0x488   :  { %1096 = vmatprep.subr.mxu0 %v694_v21  ;;  %1158 = vmatprep.mubr.f32.mxu0 %v2429_v17  ;;  %v582_v21 = vld [vmem:[#allocation14 + $0x18] sm:$0xff] }
 0x489   :  { %1766 = vmatpush1.msk.msra.mxu1 %vm354_vm5, %v877_v9  ;;  %1097 = vmatpush1.msra.mxu0 %v693_v8  ;;  %v639_v9 = vld [vmem:[#allocation14 + $0x1e0] sm:$0xff]  ;;  %v581_v8 = vld [vmem:[#allocation14 + $0x10] sm:$0xff] }
 0x48a   :  { %1187 = vmatprep.subr.mxu1 %v870_v10  ;;  %1098 = vmatprep.subr.mxu0 %v686_v22  ;;  %v632_v10 = vld [vmem:[#allocation14 + $0x1a8] sm:$0xff]  ;;  %v830_v22 = vld [vmem:[#allocation14 + $0x7d8] sm:$0xff] }
 0x48b   :  { %1188 = vmatpush1.msra.mxu1 %v869_v23  ;;  %1099 = vmatpush1.msra.mxu0 %v685_v24  ;;  %v631_v23 = vld [vmem:[#allocation14 + $0x1a0] sm:$0xff]  ;;  %v829_v24 = vld [vmem:[#allocation14 + $0x7d0] sm:$0xff] }
 0x48c   :  { %1189 = vmatprep.subr.mxu1 %v862_v25  ;;  %1100 = vmatprep.subr.mxu0 %v678_v26  ;;  %v624_v25 = vld [vmem:[#allocation14 + $0x168] sm:$0xff]  ;;  %v822_v26 = vld [vmem:[#allocation14 + $0x798] sm:$0xff] }
 0x48d   :  { %1190 = vmatpush1.msra.mxu1 %v861_v27  ;;  %1101 = vmatpush1.msra.mxu0 %v677_v28  ;;  %v623_v27 = vld [vmem:[#allocation14 + $0x160] sm:$0xff]  ;;  %v821_v28 = vld [vmem:[#allocation14 + $0x790] sm:$0xff] }
 0x48e   :  { %1191 = vmatprep.subr.mxu1 %v854_v29  ;;  %1102 = vmatprep.subr.mxu0 %v670_v30  ;;  %v616_v29 = vld [vmem:[#allocation14 + $0x128] sm:$0xff]  ;;  %v814_v30 = vld [vmem:[#allocation14 + $0x758] sm:$0xff] }
 0x48f   :  { %1192 = vmatpush1.msra.mxu1 %v853_v31  ;;  %1103 = vmatpush1.msra.mxu0 %v669_v32  ;;  %v615_v31 = vld [vmem:[#allocation14 + $0x120] sm:$0xff]  ;;  %v813_v32 = vld [vmem:[#allocation14 + $0x750] sm:$0xff] }
 0x490   :  { %1193 = vmatprep.subr.mxu1 %v846_v33  ;;  %1104 = vmatprep.subr.mxu0 %v662_v34  ;;  %v608_v33 = vld [vmem:[#allocation14 + $0xe8] sm:$0xff]  ;;  %v806_v34 = vld [vmem:[#allocation14 + $0x718] sm:$0xff] }
 0x491   :  { %1194 = vmatpush1.msra.mxu1 %v845_v35  ;;  %1105 = vmatpush1.msra.mxu0 %v661_v36  ;;  %v607_v35 = vld [vmem:[#allocation14 + $0xe0] sm:$0xff]  ;;  %v805_v36 = vld [vmem:[#allocation14 + $0x710] sm:$0xff] }
 0x492   :  { %1195 = vmatprep.subr.mxu1 %v838_v37  ;;  %1106 = vmatprep.subr.mxu0 %v654_v38  ;;  %v600_v37 = vld [vmem:[#allocation14 + $0xa8] sm:$0xff]  ;;  %v798_v38 = vld [vmem:[#allocation14 + $0x6d8] sm:$0xff] }
 0x493   :  { %1196 = vmatpush1.msra.mxu1 %v837_v39  ;;  %1229 = vmatprep.mubr.f32.mxu1 %v2121_v0  ;;  %v599_v39 = vld [vmem:[#allocation14 + $0xa0] sm:$0xff] }
 0x494   :  { %1107 = vmatpush1.msra.mxu0 %v653_v40  ;;  %1767 = vmatmul.mubr.msk.f32.vlgmr.msra.gmra.mxu1 %vm515_vm9, %v2431_v18  ;;  %v797_v40 = vld [vmem:[#allocation14 + $0x6d0] sm:$0xff] }
 0x495   :  { %1236 = vmatprep.subr.mxu1 %v704_v41  ;;  %1108 = vmatprep.subr.mxu0 %v646_v42  ;;  %v592_v41 = vld [vmem:[#allocation14 + $0x68] sm:$0xff]  ;;  %v790_v42 = vld [vmem:[#allocation14 + $0x698] sm:$0xff] }
 0x496   :  { %1237 = vmatpush1.msra.mxu1 %v703_v43  ;;  %1300 = vmatprep.mubr.f32.mxu1 %v2429_v17  ;;  %v591_v43 = vld [vmem:[#allocation14 + $0x60] sm:$0xff] }
 0x497   :  { %1109 = vmatpush1.msra.mxu0 %v645_v44  ;;  %1238 = vmatprep.subr.mxu1 %v696_v45  ;;  %v789_v44 = vld [vmem:[#allocation14 + $0x690] sm:$0xff]  ;;  %v584_v45 = vld [vmem:[#allocation14 + $0x28] sm:$0xff] }
 0x498   :  { %1110 = vmatprep.subr.mxu0 %v638_v46  ;;  %1239 = vmatpush1.msra.mxu1 %v695_v47  ;;  %v782_v46 = vld [vmem:[#allocation14 + $0x658] sm:$0xff]  ;;  %v583_v47 = vld [vmem:[#allocation14 + $0x20] sm:$0xff] }
 0x499   :  { %1111 = vmatpush1.msra.mxu0 %v637_v48  ;;  %1240 = vmatprep.subr.mxu1 %v688_v49  ;;  %v781_v48 = vld [vmem:[#allocation14 + $0x650] sm:$0xff]  ;;  %v832_v49 = vld [vmem:[#allocation14 + $0x7e8] sm:$0xff] }
 0x49a   :  { %1112 = vmatprep.subr.mxu0 %v630_v50  ;;  %1241 = vmatpush1.msra.mxu1 %v687_v51  ;;  %v774_v50 = vld [vmem:[#allocation14 + $0x618] sm:$0xff]  ;;  %v831_v51 = vld [vmem:[#allocation14 + $0x7e0] sm:$0xff] }
 0x49b   :  { %1113 = vmatpush1.msra.mxu0 %v629_v52  ;;  %1242 = vmatprep.subr.mxu1 %v680_v53  ;;  %v773_v52 = vld [vmem:[#allocation14 + $0x610] sm:$0xff]  ;;  %v824_v53 = vld [vmem:[#allocation14 + $0x7a8] sm:$0xff] }
 0x49c   :  { %1114 = vmatprep.subr.mxu0 %v622_v54  ;;  %1243 = vmatpush1.msra.mxu1 %v679_v55  ;;  %v766_v54 = vld [vmem:[#allocation14 + $0x5d8] sm:$0xff]  ;;  %v823_v55 = vld [vmem:[#allocation14 + $0x7a0] sm:$0xff] }
 0x49d   :  { %1115 = vmatpush1.msra.mxu0 %v621_v56  ;;  %1244 = vmatprep.subr.mxu1 %v672_v57  ;;  %v765_v56 = vld [vmem:[#allocation14 + $0x5d0] sm:$0xff]  ;;  %v816_v57 = vld [vmem:[#allocation14 + $0x768] sm:$0xff] }
 0x49e   :  { %1116 = vmatprep.subr.mxu0 %v614_v58  ;;  %1245 = vmatpush1.msra.mxu1 %v671_v59  ;;  %v758_v58 = vld [vmem:[#allocation14 + $0x598] sm:$0xff]  ;;  %v815_v59 = vld [vmem:[#allocation14 + $0x760] sm:$0xff] }
 0x49f   :  { %1117 = vmatpush1.msra.mxu0 %v613_v60  ;;  %1246 = vmatprep.subr.mxu1 %v664_v61  ;;  %v757_v60 = vld [vmem:[#allocation14 + $0x590] sm:$0xff]  ;;  %v808_v61 = vld [vmem:[#allocation14 + $0x728] sm:$0xff] }
 0x4a0   :  { %1118 = vmatprep.subr.mxu0 %v606_v62  ;;  %1247 = vmatpush1.msra.mxu1 %v663_v63  ;;  %v750_v62 = vld [vmem:[#allocation14 + $0x558] sm:$0xff]  ;;  %v807_v63 = vld [vmem:[#allocation14 + $0x720] sm:$0xff] }
 0x4a1   :  { %1119 = vmatpush1.msra.mxu0 %v605_v4  ;;  %1248 = vmatprep.subr.mxu1 %v656_v6  ;;  %v749_v4 = vld [vmem:[#allocation14 + $0x550] sm:$0xff]  ;;  %v800_v6 = vld [vmem:[#allocation14 + $0x6e8] sm:$0xff] }
 0x4a2   :  { %1120 = vmatprep.subr.mxu0 %v598_v7  ;;  %1249 = vmatpush1.msra.mxu1 %v655_v11  ;;  %v742_v7 = vld [vmem:[#allocation14 + $0x518] sm:$0xff]  ;;  %v799_v11 = vld [vmem:[#allocation14 + $0x6e0] sm:$0xff] }
 0x4a3   :  { %1121 = vmatpush1.msra.mxu0 %v597_v12  ;;  %1250 = vmatprep.subr.mxu1 %v648_v13  ;;  %v741_v12 = vld [vmem:[#allocation14 + $0x510] sm:$0xff]  ;;  %v792_v13 = vld [vmem:[#allocation14 + $0x6a8] sm:$0xff] }
 0x4a4   :  { %1122 = vmatprep.subr.mxu0 %v590_v14  ;;  %1251 = vmatpush1.msra.mxu1 %v647_v15  ;;  %v734_v14 = vld [vmem:[#allocation14 + $0x4d8] sm:$0xff]  ;;  %v791_v15 = vld [vmem:[#allocation14 + $0x6a0] sm:$0xff] }
 0x4a5   :  { %1123 = vmatpush1.msra.mxu0 %v589_v16  ;;  %1252 = vmatprep.subr.mxu1 %v640_v19  ;;  %v733_v16 = vld [vmem:[#allocation14 + $0x4d0] sm:$0xff]  ;;  %v784_v19 = vld [vmem:[#allocation14 + $0x668] sm:$0xff] }
 0x4a6   :  { %1124 = vmatprep.subr.mxu0 %v582_v21  ;;  %1253 = vmatpush1.msra.mxu1 %v639_v9  ;;  %v726_v21 = vld [vmem:[#allocation14 + $0x498] sm:$0xff]  ;;  %v783_v9 = vld [vmem:[#allocation14 + $0x660] sm:$0xff] }
 0x4a7   :  { %1125 = vmatpush1.msra.mxu0 %v581_v8  ;;  %1254 = vmatprep.subr.mxu1 %v632_v10  ;;  %v725_v8 = vld [vmem:[#allocation14 + $0x490] sm:$0xff]  ;;  %v776_v10 = vld [vmem:[#allocation14 + $0x628] sm:$0xff] }
 0x4a8   :  { %1126 = vmatprep.subr.mxu0 %v830_v22  ;;  %1255 = vmatpush1.msra.mxu1 %v631_v23  ;;  %v718_v22 = vld [vmem:[#allocation14 + $0x458] sm:$0xff]  ;;  %v775_v23 = vld [vmem:[#allocation14 + $0x620] sm:$0xff] }
 0x4a9   :  { %1127 = vmatpush2.msra.mxu0 %v829_v24  ;;  %1256 = vmatprep.subr.mxu1 %v624_v25  ;;  %v717_v24 = vld [vmem:[#allocation14 + $0x450] sm:$0xff]  ;;  %v768_v25 = vld [vmem:[#allocation14 + $0x5e8] sm:$0xff] }
 0x4aa   :  { %1128 = vmatprep.subr.mxu0 %v822_v26  ;;  %1257 = vmatpush1.msra.mxu1 %v623_v27  ;;  %v710_v26 = vld [vmem:[#allocation14 + $0x418] sm:$0xff]  ;;  %v767_v27 = vld [vmem:[#allocation14 + $0x5e0] sm:$0xff] }
 0x4ab   :  { %1129 = vmatpush2.msra.mxu0 %v821_v28  ;;  %1258 = vmatprep.subr.mxu1 %v616_v29  ;;  %v709_v28 = vld [vmem:[#allocation14 + $0x410] sm:$0xff]  ;;  %v760_v29 = vld [vmem:[#allocation14 + $0x5a8] sm:$0xff] }
 0x4ac   :  { %1130 = vmatprep.subr.mxu0 %v814_v30  ;;  %1259 = vmatpush1.msra.mxu1 %v615_v31  ;;  %v759_v30 = vld [vmem:[#allocation14 + $0x5a0] sm:$0xff]  ;;  %v880_v31 = vld [vmem:[#allocation14 + $0x968] sm:$0xf] }
 0x4ad   :  { %1131 = vmatpush2.msra.mxu0 %v813_v32  ;;  %1260 = vmatprep.subr.mxu1 %v608_v33  ;;  %v752_v32 = vld [vmem:[#allocation14 + $0x568] sm:$0xff]  ;;  %v879_v33 = vld [vmem:[#allocation14 + $0x960] sm:$0xf] }
 0x4ae   :  { %1132 = vmatprep.subr.mxu0 %v806_v34  ;;  %1261 = vmatpush1.msra.mxu1 %v607_v35  ;;  %v751_v34 = vld [vmem:[#allocation14 + $0x560] sm:$0xff]  ;;  %v872_v35 = vld [vmem:[#allocation14 + $0x928] sm:$0xff] }
 0x4af   :  { %1133 = vmatpush2.msra.mxu0 %v805_v36  ;;  %1262 = vmatprep.subr.mxu1 %v600_v37  ;;  %v744_v36 = vld [vmem:[#allocation14 + $0x528] sm:$0xff]  ;;  %v871_v37 = vld [vmem:[#allocation14 + $0x920] sm:$0xff] }
 0x4b0   :  { %1134 = vmatprep.subr.mxu0 %v798_v38  ;;  %1263 = vmatpush1.msra.mxu1 %v599_v39  ;;  %v743_v38 = vld [vmem:[#allocation14 + $0x520] sm:$0xff]  ;;  %v864_v39 = vld [vmem:[#allocation14 + $0x8e8] sm:$0xff] }
 0x4b1   :  { %1135 = vmatpush2.msra.mxu0 %v797_v40  ;;  %1264 = vmatprep.subr.mxu1 %v592_v41  ;;  %v736_v40 = vld [vmem:[#allocation14 + $0x4e8] sm:$0xff]  ;;  %v863_v41 = vld [vmem:[#allocation14 + $0x8e0] sm:$0xff] }
 0x4b2   :  { %1136 = vmatprep.subr.mxu0 %v790_v42  ;;  %1265 = vmatpush1.msra.mxu1 %v591_v43  ;;  %v735_v42 = vld [vmem:[#allocation14 + $0x4e0] sm:$0xff]  ;;  %v856_v43 = vld [vmem:[#allocation14 + $0x8a8] sm:$0xff] }
 0x4b3   :  { %1137 = vmatpush2.msra.mxu0 %v789_v44  ;;  %1266 = vmatprep.subr.mxu1 %v584_v45  ;;  %v728_v44 = vld [vmem:[#allocation14 + $0x4a8] sm:$0xff]  ;;  %v855_v45 = vld [vmem:[#allocation14 + $0x8a0] sm:$0xff] }
 0x4b4   :  { %1138 = vmatprep.subr.mxu0 %v782_v46  ;;  %1267 = vmatpush1.msra.mxu1 %v583_v47  ;;  %v727_v46 = vld [vmem:[#allocation14 + $0x4a0] sm:$0xff]  ;;  %v848_v47 = vld [vmem:[#allocation14 + $0x868] sm:$0xff] }
 0x4b5   :  { %1139 = vmatpush2.msra.mxu0 %v781_v48  ;;  %1268 = vmatprep.subr.mxu1 %v832_v49  ;;  %v720_v48 = vld [vmem:[#allocation14 + $0x468] sm:$0xff]  ;;  %v847_v49 = vld [vmem:[#allocation14 + $0x860] sm:$0xff] }
 0x4b6   :  { %1140 = vmatprep.subr.mxu0 %v774_v50  ;;  %1269 = vmatpush2.msra.mxu1 %v831_v51  ;;  %v719_v50 = vld [vmem:[#allocation14 + $0x460] sm:$0xff]  ;;  %v840_v51 = vld [vmem:[#allocation14 + $0x828] sm:$0xff] }
 0x4b7   :  { %1141 = vmatpush2.msra.mxu0 %v773_v52  ;;  %1270 = vmatprep.subr.mxu1 %v824_v53  ;;  %v712_v52 = vld [vmem:[#allocation14 + $0x428] sm:$0xff]  ;;  %v839_v53 = vld [vmem:[#allocation14 + $0x820] sm:$0xff] }
 0x4b8   :  { %1142 = vmatprep.subr.mxu0 %v766_v54  ;;  %1271 = vmatpush2.msra.mxu1 %v823_v55  ;;  %v711_v54 = vld [vmem:[#allocation14 + $0x420] sm:$0xff]  ;;  %v706_v55 = vld [vmem:[#allocation14 + $0x3f8] sm:$0xff] }
 0x4b9   :  { %1143 = vmatpush2.msra.mxu0 %v765_v56  ;;  %1272 = vmatprep.subr.mxu1 %v816_v57  ;;  %v705_v56 = vld [vmem:[#allocation14 + $0x3f0] sm:$0xff]  ;;  %v882_v57 = vld [vmem:[#allocation14 + $0x978] sm:$0xf] }
 0x4ba   :  { %1144 = vmatprep.subr.mxu0 %v758_v58  ;;  %1273 = vmatpush2.msra.mxu1 %v815_v59  ;;  %v698_v58 = vld [vmem:[#allocation14 + $0x3b8] sm:$0xff]  ;;  %v881_v59 = vld [vmem:[#allocation14 + $0x970] sm:$0xf] }
 0x4bb   :  { %1145 = vmatpush2.msra.mxu0 %v757_v60  ;;  %1274 = vmatprep.subr.mxu1 %v808_v61  ;;  %v697_v60 = vld [vmem:[#allocation14 + $0x3b0] sm:$0xff]  ;;  %v874_v61 = vld [vmem:[#allocation14 + $0x938] sm:$0xff] }
 0x4bc   :  { %1146 = vmatprep.subr.mxu0 %v750_v62  ;;  %1275 = vmatpush2.msra.mxu1 %v807_v63  ;;  %v690_v62 = vld [vmem:[#allocation14 + $0x378] sm:$0xff]  ;;  %v873_v63 = vld [vmem:[#allocation14 + $0x930] sm:$0xff] }
 0x4bd   :  { %1147 = vmatpush2.msra.mxu0 %v749_v4  ;;  %1276 = vmatprep.subr.mxu1 %v800_v6  ;;  %v689_v4 = vld [vmem:[#allocation14 + $0x370] sm:$0xff]  ;;  %v866_v6 = vld [vmem:[#allocation14 + $0x8f8] sm:$0xff] }
 0x4be   :  { %1148 = vmatprep.subr.mxu0 %v742_v7  ;;  %1277 = vmatpush2.msra.mxu1 %v799_v11  ;;  %v682_v7 = vld [vmem:[#allocation14 + $0x338] sm:$0xff]  ;;  %v865_v11 = vld [vmem:[#allocation14 + $0x8f0] sm:$0xff] }
 0x4bf   :  { %1149 = vmatpush2.msra.mxu0 %v741_v12  ;;  %1278 = vmatprep.subr.mxu1 %v792_v13  ;;  %v681_v12 = vld [vmem:[#allocation14 + $0x330] sm:$0xff]  ;;  %v858_v13 = vld [vmem:[#allocation14 + $0x8b8] sm:$0xff] }
 0x4c0   :  { %1150 = vmatprep.subr.mxu0 %v734_v14  ;;  %1279 = vmatpush2.msra.mxu1 %v791_v15  ;;  %v857_v14 = vld [vmem:[#allocation14 + $0x8b0] sm:$0xff] }
 0x4c1   :  { %1151 = vmatpush2.msra.mxu0 %v733_v16  ;;  %1280 = vmatprep.subr.mxu1 %v784_v19  ;;  %v673_v15 = vld [vmem:[#allocation14 + $0x2f0] sm:$0xff]  ;;  %v850_v16 = vld [vmem:[#allocation14 + $0x878] sm:$0xff] }
 0x4c2   :  { %1152 = vmatprep.subr.mxu0 %v726_v21  ;;  %1281 = vmatpush2.msra.mxu1 %v783_v9  ;;  %v666_v19 = vld [vmem:[#allocation14 + $0x2b8] sm:$0xff]  ;;  %v849_v21 = vld [vmem:[#allocation14 + $0x870] sm:$0xff] }
 0x4c3   :  { %1153 = vmatpush2.msra.mxu0 %v725_v8  ;;  %1282 = vmatprep.subr.mxu1 %v776_v10  ;;  %v665_v9 = vld [vmem:[#allocation14 + $0x2b0] sm:$0xff]  ;;  %v842_v8 = vld [vmem:[#allocation14 + $0x838] sm:$0xff] }
 0x4c4   :  { %1154 = vmatprep.subr.mxu0 %v718_v22  ;;  %1283 = vmatpush2.msra.mxu1 %v775_v23  ;;  %v658_v10 = vld [vmem:[#allocation14 + $0x278] sm:$0xff]  ;;  %v841_v22 = vld [vmem:[#allocation14 + $0x830] sm:$0xff] }
 0x4c5   :  { %1155 = vmatpush2.msra.mxu0 %v717_v24  ;;  %1284 = vmatprep.subr.mxu1 %v768_v25  ;;  %v657_v23 = vld [vmem:[#allocation14 + $0x270] sm:$0xff]  ;;  %v650_v24 = vld [vmem:[#allocation14 + $0x238] sm:$0xff] }
 0x4c6   :  { %1156 = vmatprep.subr.mxu0 %v710_v26  ;;  %1285 = vmatpush2.msra.mxu1 %v767_v27  ;;  %v649_v25 = vld [vmem:[#allocation14 + $0x230] sm:$0xff]  ;;  %v642_v26 = vld [vmem:[#allocation14 + $0x1f8] sm:$0xff] }
 0x4c7   :  { %1157 = vmatpush2.msra.mxu0 %v709_v28  ;;  %1286 = vmatprep.subr.mxu1 %v760_v29  ;;  %v641_v27 = vld [vmem:[#allocation14 + $0x1f0] sm:$0xff]  ;;  %v634_v28 = vld [vmem:[#allocation14 + $0x1b8] sm:$0xff] }
 0x4c8   :  { %1159 = vmatmul.mubr.f32.vlgmr.msra.gmra.mxu0 %v2433_v20  ;;  %1287 = vmatpush2.msra.mxu1 %v759_v30  ;;  %v633_v29 = vld [vmem:[#allocation14 + $0x1b0] sm:$0xff]  ;;  %v626_v30 = vld [vmem:[#allocation14 + $0x178] sm:$0xff] }
 0x4c9   :  { %1768 = vmatprep.subr.msk.mxu0 %vm354_vm5, %v880_v31  ;;  %1288 = vmatprep.subr.mxu1 %v752_v32  ;;  %v625_v31 = vld [vmem:[#allocation14 + $0x170] sm:$0xff]  ;;  %v618_v32 = vld [vmem:[#allocation14 + $0x138] sm:$0xff] }
 0x4ca   :  { %1769 = vmatpush1.msk.msra.mxu0 %vm354_vm5, %v879_v33  ;;  %1289 = vmatpush2.msra.mxu1 %v751_v34  ;;  %v610_v33 = vld [vmem:[#allocation14 + $0xf8] sm:$0xff]  ;;  %v609_v34 = vld [vmem:[#allocation14 + $0xf0] sm:$0xff] }
 0x4cb   :  { %1329 = vmatprep.subr.mxu0 %v872_v35  ;;  %1290 = vmatprep.subr.mxu1 %v744_v36  ;;  %v601_v35 = vld [vmem:[#allocation14 + $0xb0] sm:$0xff]  ;;  %v594_v36 = vld [vmem:[#allocation14 + $0x78] sm:$0xff] }
 0x4cc   :  { %1330 = vmatpush1.msra.mxu0 %v871_v37  ;;  %1291 = vmatpush2.msra.mxu1 %v743_v38  ;;  %v593_v37 = vld [vmem:[#allocation14 + $0x70] sm:$0xff]  ;;  %v586_v38 = vld [vmem:[#allocation14 + $0x38] sm:$0xff] }
 0x4cd   :  { %1331 = vmatprep.subr.mxu0 %v864_v39  ;;  %1292 = vmatprep.subr.mxu1 %v736_v40  ;;  %v585_v39 = vld [vmem:[#allocation14 + $0x30] sm:$0xff]  ;;  %v834_v40 = vld [vmem:[#allocation14 + $0x7f8] sm:$0xff] }
 0x4ce   :  { %1332 = vmatpush1.msra.mxu0 %v863_v41  ;;  %1293 = vmatpush2.msra.mxu1 %v735_v42  ;;  %v833_v41 = vld [vmem:[#allocation14 + $0x7f0] sm:$0xff]  ;;  %v826_v42 = vld [vmem:[#allocation14 + $0x7b8] sm:$0xff] }
 0x4cf   :  { %1333 = vmatprep.subr.mxu0 %v856_v43  ;;  %1294 = vmatprep.subr.mxu1 %v728_v44  ;;  %v825_v43 = vld [vmem:[#allocation14 + $0x7b0] sm:$0xff]  ;;  %v818_v44 = vld [vmem:[#allocation14 + $0x778] sm:$0xff] }
 0x4d0   :  { %1334 = vmatpush1.msra.mxu0 %v855_v45  ;;  %1295 = vmatpush2.msra.mxu1 %v727_v46  ;;  %v817_v45 = vld [vmem:[#allocation14 + $0x770] sm:$0xff]  ;;  %v810_v46 = vld [vmem:[#allocation14 + $0x738] sm:$0xff] }
 0x4d1   :  { %1335 = vmatprep.subr.mxu0 %v848_v47  ;;  %1296 = vmatprep.subr.mxu1 %v720_v48  ;;  %v809_v47 = vld [vmem:[#allocation14 + $0x730] sm:$0xff]  ;;  %v802_v48 = vld [vmem:[#allocation14 + $0x6f8] sm:$0xff] }
 0x4d2   :  { %1336 = vmatpush1.msra.mxu0 %v847_v49  ;;  %1297 = vmatpush2.msra.mxu1 %v719_v50  ;;  %v801_v49 = vld [vmem:[#allocation14 + $0x6f0] sm:$0xff]  ;;  %v794_v50 = vld [vmem:[#allocation14 + $0x6b8] sm:$0xff] }
 0x4d3   :  { %1337 = vmatprep.subr.mxu0 %v840_v51  ;;  %1298 = vmatprep.subr.mxu1 %v712_v52  ;;  %v793_v51 = vld [vmem:[#allocation14 + $0x6b0] sm:$0xff]  ;;  %v786_v52 = vld [vmem:[#allocation14 + $0x678] sm:$0xff] }
 0x4d4   :  { %1338 = vmatpush1.msra.mxu0 %v839_v53  ;;  %1371 = vmatprep.mubr.f32.mxu0 %v2121_v0  ;;  %v785_v53 = vld [vmem:[#allocation14 + $0x670] sm:$0xff] }
 0x4d5   :  { %1299 = vmatpush2.msra.mxu1 %v711_v54  ;;  %1770 = vmatmul.mubr.msk.f32.vlgmr.msra.gmra.mxu0 %vm515_vm9, %v2431_v18  ;;  %v778_v54 = vld [vmem:[#allocation14 + $0x638] sm:$0xff] }
 0x4d6   :  { %1378 = vmatprep.subr.mxu0 %v706_v55  ;;  %1301 = vmatmul.mubr.f32.vlgmr.msra.gmra.mxu1 %v2433_v20  ;;  %v777_v55 = vld [vmem:[#allocation14 + $0x630] sm:$0xff] }
 0x4d7   :  { %1379 = vmatpush1.msra.mxu0 %v705_v56  ;;  %1442 = vmatprep.mubr.f32.mxu0 %v2429_v17  ;;  %v674_v17 = vld [vmem:[#allocation14 + $0x2f8] sm:$0xff] }
 0x4d8   :  { %1771 = vmatprep.subr.msk.mxu1 %vm354_vm5, %v882_v57  ;;  %1380 = vmatprep.subr.mxu0 %v698_v58  ;;  %v770_v56 = vld [vmem:[#allocation14 + $0x5f8] sm:$0xff]  ;;  %v769_v57 = vld [vmem:[#allocation14 + $0x5f0] sm:$0xff] }
 0x4d9   :  { %1772 = vmatpush1.msk.msra.mxu1 %vm354_vm5, %v881_v59  ;;  %1381 = vmatpush1.msra.mxu0 %v697_v60  ;;  %v762_v58 = vld [vmem:[#allocation14 + $0x5b8] sm:$0xff]  ;;  %v761_v59 = vld [vmem:[#allocation14 + $0x5b0] sm:$0xff] }
 0x4da   :  { %1471 = vmatprep.subr.mxu1 %v874_v61  ;;  %1382 = vmatprep.subr.mxu0 %v690_v62  ;;  %v754_v60 = vld [vmem:[#allocation14 + $0x578] sm:$0xff]  ;;  %v753_v61 = vld [vmem:[#allocation14 + $0x570] sm:$0xff] }
 0x4db   :  { %1472 = vmatpush1.msra.mxu1 %v873_v63  ;;  %1383 = vmatpush1.msra.mxu0 %v689_v4  ;;  %v746_v62 = vld [vmem:[#allocation14 + $0x538] sm:$0xff]  ;;  %v745_v63 = vld [vmem:[#allocation14 + $0x530] sm:$0xff] }
 0x4dc   :  { %1473 = vmatprep.subr.mxu1 %v866_v6  ;;  %1384 = vmatprep.subr.mxu0 %v682_v7  ;;  %v738_v4 = vld [vmem:[#allocation14 + $0x4f8] sm:$0xff]  ;;  %v737_v6 = vld [vmem:[#allocation14 + $0x4f0] sm:$0xff] }
 0x4dd   :  { %1474 = vmatpush1.msra.mxu1 %v865_v11  ;;  %1385 = vmatpush1.msra.mxu0 %v681_v12  ;;  %v730_v7 = vld [vmem:[#allocation14 + $0x4b8] sm:$0xff]  ;;  %v729_v11 = vld [vmem:[#allocation14 + $0x4b0] sm:$0xff] }
 0x4de   :  { %1475 = vmatprep.subr.mxu1 %v858_v13  ;;  %1386 = vmatprep.subr.mxu0 %v674_v17  ;;  %v722_v12 = vld [vmem:[#allocation14 + $0x478] sm:$0xff]  ;;  %v721_v13 = vld [vmem:[#allocation14 + $0x470] sm:$0xff] }
 0x4df   :  { %1476 = vmatpush1.msra.mxu1 %v857_v14  ;;  %1387 = vmatpush1.msra.mxu0 %v673_v15  ;;  %v714_v17 = vld [vmem:[#allocation14 + $0x438] sm:$0xff]  ;;  %v713_v14 = vld [vmem:[#allocation14 + $0x430] sm:$0xff] }
 0x4e0   :  { %1477 = vmatprep.subr.mxu1 %v850_v16  ;;  %1388 = vmatprep.subr.mxu0 %v666_v19  ;;  %v2459_v19 = vld [vmem:[#allocation16] sm:$0xff] }
 0x4e1   :  { %1478 = vmatpush1.msra.mxu1 %v849_v21  ;;  %1389 = vmatpush1.msra.mxu0 %v665_v9  ;;  %v892_v21 = vrot.slane %v2459_v19, %v2386_v5 }
 0x4e2   :  { %1479 = vmatprep.subr.mxu1 %v842_v8  ;;  %1390 = vmatprep.subr.mxu0 %v658_v10  ;;  %v888_v10 = vrot.slane %v2459_v19, %v2380_v2 }
 0x4e3   :  { %1480 = vmatpush1.msra.mxu1 %v841_v22  ;;  %1513 = vmatprep.mubr.f32.mxu1 %v2121_v0  ;;  %v617_v0 = vld [vmem:[#allocation14 + $0x130] sm:$0xff]  ;;  %v896_v22 = vrot.slane %v2459_v19, %v2383_v3 }
 0x4e4   :  { %1391 = vmatpush1.msra.mxu0 %v657_v23  ;;  %1773 = vmatmul.mubr.msk.f32.vlgmr.msra.gmra.mxu1 %vm515_vm9, %v2431_v18  ;;  %v602_v18 = vld [vmem:[#allocation14 + $0xb8] sm:$0xff]  ;;  %v2468_v23 = vsub.s32 3, %v2377_v1 }
 0x4e5   :  { %1392 = vmatprep.subr.mxu0 %v650_v24 }
 0x4e6   :  { %1393 = vmatpush1.msra.mxu0 %v649_v25 }
 0x4e7   :  { %1394 = vmatprep.subr.mxu0 %v642_v26  ;;  %v2471_v26 = vsub.s32 4, %v2377_v1 }
 0x4e8   :  { %1395 = vmatpush1.msra.mxu0 %v641_v27 }
 0x4e9   :  { %1396 = vmatprep.subr.mxu0 %v634_v28 }
 0x4ea   :  { %1397 = vmatpush1.msra.mxu0 %v633_v29  ;;  %v900_v29 = vrot.slane %v2459_v19, %v2468_v23 }
 0x4eb   :  { %1398 = vmatprep.subr.mxu0 %v626_v30 }
 0x4ec   :  { %1399 = vmatpush1.msra.mxu0 %v625_v31 }
 0x4ed   :  { %1400 = vmatprep.subr.mxu0 %v618_v32 }
 0x4ee   :  { %1401 = vmatpush1.msra.mxu0 %v617_v0  ;;  %v904_v0 = vrot.slane %v2459_v19, %v2471_v26 }
 0x4ef   :  { %1402 = vmatprep.subr.mxu0 %v610_v33  ;;  %v2478_v33 = vsub.s32 5, %v2377_v1 }
 0x4f0   :  { %1403 = vmatpush1.msra.mxu0 %v609_v34 }
 0x4f1   :  { %1404 = vmatprep.subr.mxu0 %v602_v18 }
 0x4f2   :  { %1405 = vmatpush1.msra.mxu0 %v601_v35 }
 0x4f3   :  { %1406 = vmatprep.subr.mxu0 %v594_v36 }
 0x4f4   :  { %1407 = vmatpush1.msra.mxu0 %v593_v37 }
 0x4f5   :  { %1408 = vmatprep.subr.mxu0 %v586_v38 }
 0x4f6   :  { %1409 = vmatpush1.msra.mxu0 %v585_v39  ;;  %v908_v39 = vrot.slane %v2459_v19, %v2478_v33 }
 0x4f7   :  { %1410 = vmatprep.subr.mxu0 %v834_v40 }
 0x4f8   :  { %1411 = vmatpush2.msra.mxu0 %v833_v41 }
 0x4f9   :  { %1412 = vmatprep.subr.mxu0 %v826_v42 }
 0x4fa   :  { %1413 = vmatpush2.msra.mxu0 %v825_v43 }
 0x4fb   :  { %1414 = vmatprep.subr.mxu0 %v818_v44 }
 0x4fc   :  { %1415 = vmatpush2.msra.mxu0 %v817_v45 }
 0x4fd   :  { %1416 = vmatprep.subr.mxu0 %v810_v46 }
 0x4fe   :  { %1417 = vmatpush2.msra.mxu0 %v809_v47 }
 0x4ff   :  { %1418 = vmatprep.subr.mxu0 %v802_v48 }
 0x500   :  { %1419 = vmatpush2.msra.mxu0 %v801_v49 }
 0x501   :  { %1420 = vmatprep.subr.mxu0 %v794_v50 }
 0x502   :  { %1421 = vmatpush2.msra.mxu0 %v793_v51  ;;  %v2483_v51 = vsub.s32 6, %v2377_v1 }
 0x503   :  { %1422 = vmatprep.subr.mxu0 %v786_v52 }
 0x504   :  { %1423 = vmatpush2.msra.mxu0 %v785_v53 }
 0x505   :  { %1424 = vmatprep.subr.mxu0 %v778_v54 }
 0x506   :  { %1425 = vmatpush2.msra.mxu0 %v777_v55 }
 0x507   :  { %1426 = vmatprep.subr.mxu0 %v770_v56  ;;  %v2486_v56 = vsub.s32 7, %v2377_v1 }
 0x508   :  { %1427 = vmatpush2.msra.mxu0 %v769_v57 }
 0x509   :  { %1428 = vmatprep.subr.mxu0 %v762_v58 }
 0x50a   :  { %1429 = vmatpush2.msra.mxu0 %v761_v59  ;;  %v912_v59 = vrot.slane %v2459_v19, %v2483_v51 }
 0x50b   :  { %1430 = vmatprep.subr.mxu0 %v754_v60 }
 0x50c   :  { %1431 = vmatpush2.msra.mxu0 %v753_v61 }
 0x50d   :  { %1432 = vmatprep.subr.mxu0 %v746_v62  ;;  %v916_v62 = vrot.slane %v2459_v19, %v2486_v56 }
 0x50e   :  { %1433 = vmatpush2.msra.mxu0 %v745_v63 }
 0x50f   :  { %1434 = vmatprep.subr.mxu0 %v738_v4 }
 0x510   :  { %1435 = vmatpush2.msra.mxu0 %v737_v6 }
 0x511   :  { %1436 = vmatprep.subr.mxu0 %v730_v7 }
 0x512   :  { %1437 = vmatpush2.msra.mxu0 %v729_v11 }
 0x513   :  { %1438 = vmatprep.subr.mxu0 %v722_v12 }
 0x514   :  { %1439 = vmatpush2.msra.mxu0 %v721_v13 }
 0x515   :  { %1440 = vmatprep.subr.mxu0 %v714_v17 }
 0x516   :  { %1441 = vmatpush2.msra.mxu0 %v713_v14 }
 0x517   :  { %1443 = vmatmul.mubr.f32.vlgmr.msra.gmra.mxu0 %v2433_v20 }
 0x546   :  { %v1089_v15 = vpop.f32.mrf.mxu0 }
 0x547   :  { %v1018_v16 = vpop.f32.mrf.mxu1 }
 0x548   :  { %v1091_v9 = vpop.f32.mrf.mxu0  ;;  %v1019_v27 = vadd.f32 %v1018_v16, %v888_v10 }
 0x549   :  { %v1020_v8 = vpop.f32.mrf.mxu1 }
 0x54a   :  { %v1021_v25 = vadd.f32 %v1020_v8, %v892_v21  ;;  %v1090_v18 = vadd.f32 %v1089_v15, %v1019_v27 }
 0x54c   :  { %v1092_v32 = vadd.f32 %v1091_v9, %v1021_v25  ;;  %v1528_v41 = vmul.f32 0.02, %v1090_v18  ;;  %vm1520_vm11 = vcmp.ge.f32.partialorder %v1090_v18, 0.0 }
 0x54e   :  { %v1529_v37 = vmul.f32 0.02, %v1092_v32  ;;  %vm1521_vm10 = vcmp.ge.f32.partialorder %v1092_v32, 0.0  ;;  %v1536_v48 = vsel %vm1520_vm11, %v1090_v18, %v1528_v41 }
 0x550   :  { %v1537_v45 = vsel %vm1521_vm10, %v1092_v32, %v1529_v37 }
 0x551   :  { %v1544_v52 = vadd.f32 %v1537_v45, %v1536_v48 }
 0x554   :  { %v1231_v24 = vpop.f32.mrf.mxu1 }
 0x556   :  { %v1233_v30 = vpop.f32.mrf.mxu1 }
 0x588   :  { %v1160_v20 = vpop.f32.mrf.mxu0 }
 0x589   :  { %v1161_v28 = vadd.f32 %v1160_v20, %v896_v22 }
 0x58a   :  { %v1162_v31 = vpop.f32.mrf.mxu0 }
 0x58b   :  { %v1232_v35 = vadd.f32 %v1231_v24, %v1161_v28  ;;  %v1163_v36 = vadd.f32 %v1162_v31, %v900_v29 }
 0x58d   :  { %v1530_v42 = vmul.f32 0.02, %v1232_v35  ;;  %v1234_v43 = vadd.f32 %v1233_v30, %v1163_v36  ;;  %vm1522_vm12 = vcmp.ge.f32.partialorder %v1232_v35, 0.0 }
 0x58f   :  { %v1538_v49 = vsel %vm1522_vm12, %v1232_v35, %v1530_v42  ;;  %v1531_v50 = vmul.f32 0.02, %v1234_v43  ;;  %vm1523_vm13 = vcmp.ge.f32.partialorder %v1234_v43, 0.0 }
 0x590   :  { %v1545_v57 = vadd.f32 %v1544_v52, %v1538_v49 }
 0x591   :  { %v1539_v58 = vsel %vm1523_vm13, %v1234_v43, %v1531_v50 }
 0x592   :  { %v1546_v63 = vadd.f32 %v1545_v57, %v1539_v58 }
 0x595   :  { %v1373_v44 = vpop.f32.mrf.mxu0 }
 0x596   :  { %v1302_v34 = vpop.f32.mrf.mxu1 }
 0x597   :  { %v1303_v38 = vadd.f32 %v1302_v34, %v904_v0  ;;  %v1375_v53 = vpop.f32.mrf.mxu0 }
 0x598   :  { %v1304_v40 = vpop.f32.mrf.mxu1 }
 0x599   :  { %v1374_v46 = vadd.f32 %v1373_v44, %v1303_v38  ;;  %v1305_v47 = vadd.f32 %v1304_v40, %v908_v39 }
 0x59b   :  { %v1532_v54 = vmul.f32 0.02, %v1374_v46  ;;  %v1376_v55 = vadd.f32 %v1375_v53, %v1305_v47  ;;  %vm1524_vm14 = vcmp.ge.f32.partialorder %v1374_v46, 0.0 }
 0x59d   :  { %v1540_v60 = vsel %vm1524_vm14, %v1374_v46, %v1532_v54  ;;  %v1533_v61 = vmul.f32 0.02, %v1376_v55  ;;  %vm1525_vm15 = vcmp.ge.f32.partialorder %v1376_v55, 0.0  ;;  %v1594_v54 = vld [vmem:[#allocation17] sm:$0xff] }
 0x59e   :  { %v1547_v12 = vadd.f32 %v1546_v63, %v1540_v60  ;;  %v1611_v57 = vrot.slane %v1594_v54, %v2468_v23  ;;  %v1623_v63 = vrot.slane %v1594_v54, %v2483_v51 }
 0x59f   :  { %v1541_v17 = vsel %vm1525_vm15, %v1376_v55, %v1533_v61  ;;  %v1644_v55 = vld [vmem:[#allocation19] sm:$0xff]  ;;  %v1619_v61 = vrot.slane %v1594_v54, %v2478_v33 }
 0x5a0   :  { %v1548_v21 = vadd.f32 %v1547_v12, %v1541_v17  ;;  %v1607_v12 = vrot.slane %v1594_v54, %v2383_v3 }
 0x5a4   :  { %v1515_v4 = vpop.f32.mrf.mxu1 }
 0x5a6   :  { %v1517_v14 = vpop.f32.mrf.mxu1 }
 0x5d7   :  { %v1444_v6 = vpop.f32.mrf.mxu0 }
 0x5d8   :  { %v1445_v7 = vadd.f32 %v1444_v6, %v912_v59  ;;  %v1615_v59 = vrot.slane %v1594_v54, %v2471_v26  ;;  %v1627_v6 = vrot.slane %v1594_v54, %v2486_v56 }
 0x5d9   :  { %v1446_v11 = vpop.f32.mrf.mxu0 }
 0x5da   :  { %v1516_v1 = vadd.f32 %v1515_v4, %v1445_v7  ;;  %v1447_v13 = vadd.f32 %v1446_v11, %v916_v62  ;;  %v1669_v62 = vrot.slane %v1644_v55, %v2478_v33  ;;  %v1673_v4 = vrot.slane %v1644_v55, %v2483_v51 }
 0x5db   :  { %v1677_v7 = vrot.slane %v1644_v55, %v2486_v56  ;;  %v1599_v11 = vrot.slane %v1594_v54, %v2380_v2  ;;  %v1657_v33 = vrot.slane %v1644_v55, %v2383_v3 }
 0x5dc   :  { %v1534_v15 = vmul.f32 0.02, %v1516_v1  ;;  %v1518_v16 = vadd.f32 %v1517_v14, %v1447_v13  ;;  %vm1526_vm0 = vcmp.ge.f32.partialorder %v1516_v1, 0.0  ;;  %v1653_v13 = vrot.slane %v1644_v55, %v2386_v5 }
 0x5de   :  { %v1535_v9 = vmul.f32 0.02, %v1518_v16  ;;  %vm1527_vm1 = vcmp.ge.f32.partialorder %v1518_v16, 0.0  ;;  %v1542_v8 = vsel %vm1526_vm0, %v1516_v1, %v1534_v15 }
 0x5df   :  { %v1549_v19 = vadd.f32 %v1548_v21, %v1542_v8 }
 0x5e0   :  { %v1543_v10 = vsel %vm1527_vm1, %v1518_v16, %v1535_v9 }
 0x5e1   :  { %v1551_v22 = vsel %vm1550_vm2, %v1543_v10, 0.0 }
 0x5e2   :  { %v1552_v24 = vadd.f32 %v1551_v22, %v1549_v19 }
 0x5e4   :  { %1553 = vadd.xlane.f32.xlu0 %v1552_v24 }
 0x66d   :  { %v1554_v20 = vpop.xlane.xlu0 %1553 }
 0x66e   :  { %v1556_v25 = vmul.f32 0.001, %v1554_v20 }
 0x670   :  { %v1557_v27 = vsub.f32 %v1536_v48, %v1556_v25  ;;  %v1558_v28 = vsub.f32 %v1537_v45, %v1556_v25  ;;  %v1559_v29 = vsub.f32 %v1538_v49, %v1556_v25  ;;  %v1560_v30 = vsub.f32 %v1539_v58, %v1556_v25 }
 0x671   :  { %v1561_v0 = vsub.f32 %v1540_v60, %v1556_v25  ;;  %v1562_v35 = vsub.f32 %v1541_v17, %v1556_v25  ;;  %v1564_v38 = vsub.f32 %v1543_v10, %v1556_v25  ;;  %v1563_v39 = vsub.f32 %v1542_v8, %v1556_v25 }
 0x672   :  { %v1565_v31 = vmul.f32 %v1557_v27, %v1557_v27  ;;  %v1566_v32 = vmul.f32 %v1558_v28, %v1558_v28  ;;  %v1567_v34 = vmul.f32 %v1559_v29, %v1559_v29  ;;  %v1568_v36 = vmul.f32 %v1560_v30, %v1560_v30 }
 0x673   :  { %v1569_v40 = vmul.f32 %v1561_v0, %v1561_v0  ;;  %v1570_v42 = vmul.f32 %v1562_v35, %v1562_v35  ;;  %v1572_v44 = vmul.f32 %v1564_v38, %v1564_v38  ;;  %v1571_v46 = vmul.f32 %v1563_v39, %v1563_v39 }
 0x674   :  { %v1573_v18 = vadd.f32 %v1566_v32, %v1565_v31  ;;  %v1661_v58 = vrot.slane %v1644_v55, %v2468_v23  ;;  %v1665_v60 = vrot.slane %v1644_v55, %v2471_v26  ;;  %v1603_v23 = vrot.slane %v1594_v54, %v2386_v5 }
 0x675   :  { %v1579_v48 = vsel %vm1550_vm2, %v1572_v44, 0.0  ;;  %v1649_v26 = vrot.slane %v1644_v55, %v2380_v2 }
 0x676   :  { %v1574_v37 = vadd.f32 %v1573_v18, %v1567_v34 }
 0x678   :  { %v1575_v41 = vadd.f32 %v1574_v37, %v1568_v36 }
 0x67a   :  { %v1576_v43 = vadd.f32 %v1575_v41, %v1569_v40 }
 0x67c   :  { %v1577_v47 = vadd.f32 %v1576_v43, %v1570_v42 }
 0x67e   :  { %v1578_v45 = vadd.f32 %v1577_v47, %v1571_v46 }
 0x680   :  { %v1580_v49 = vadd.f32 %v1579_v48, %v1578_v45 }
 0x682   :  { %1581 = vadd.xlane.f32.xlu1 %v1580_v49 }
 0x70b   :  { %v1582_v50 = vpop.xlane.xlu1 %1581 }
 0x70c   :  { %v1583_v52 = vmul.f32 0.001, %v1582_v50 }
 0x70e   :  { %v1584_v53 = vadd.f32 1e-05, %v1583_v52 }
 0x710   :  { %1852 = vrsqrt.f32 %v1584_v53 }
 0x71d   :  { %v1853_v1 = vpop.eup %1852 }
 0x71e   :  { %v1586_v17 = vmul.f32 %v1853_v1, %v1557_v27  ;;  %v1587_v51 = vmul.f32 %v1853_v1, %v1558_v28  ;;  %v1588_v14 = vmul.f32 %v1853_v1, %v1559_v29  ;;  %v1589_v15 = vmul.f32 %v1853_v1, %v1560_v30 }
 0x71f   :  { %v1590_v16 = vmul.f32 %v1853_v1, %v1561_v0  ;;  %v1591_v56 = vmul.f32 %v1853_v1, %v1562_v35  ;;  %v1592_v21 = vmul.f32 %v1853_v1, %v1563_v39  ;;  %v1593_v9 = vmul.f32 %v1853_v1, %v1564_v38 }
 0x720   :  { %v1636_v8 = vmul.f32 %v1599_v11, %v1586_v17  ;;  %v1637_v19 = vmul.f32 %v1603_v23, %v1587_v51  ;;  %v1638_v10 = vmul.f32 %v1607_v12, %v1588_v14  ;;  %v1639_v22 = vmul.f32 %v1611_v57, %v1589_v15 }
 0x721   :  { %v1640_v24 = vmul.f32 %v1615_v59, %v1590_v16  ;;  %v1641_v20 = vmul.f32 %v1619_v61, %v1591_v56  ;;  %v1642_v2 = vmul.f32 %v1623_v63, %v1592_v21  ;;  %v1643_v25 = vmul.f32 %v1627_v6, %v1593_v9 }
 0x722   :  { %v1686_v5 = vadd.f32 %v1649_v26, %v1636_v8  ;;  %v1687_v31 = vadd.f32 %v1653_v13, %v1637_v19  ;;  %v1688_v3 = vadd.f32 %v1657_v33, %v1638_v10  ;;  %v1689_v32 = vadd.f32 %v1661_v58, %v1639_v22 }
 0x723   :  { %v1690_v27 = vadd.f32 %v1665_v60, %v1640_v24  ;;  %v1691_v28 = vadd.f32 %v1669_v62, %v1641_v20  ;;  %v1692_v29 = vadd.f32 %v1673_v4, %v1642_v2  ;;  %v1693_v30 = vadd.f32 %v1677_v7, %v1643_v25 }
 0x724   :  { %v1778_v0 = vpack.c.bf16 %v1687_v31, %v1686_v5  ;;  %v1779_v34 = vpack.c.bf16 %v1689_v32, %v1688_v3 }
 0x725   :  { %v1780_v18 = vpack.c.bf16 %v1691_v28, %v1690_v27  ;;  %v1781_v35 = vpack.c.bf16 %v1693_v30, %v1692_v29 }
 0x726   :  { %1726 = vst [vmem:[#allocation20] sm:$0xff] %v1778_v0  ;;  %1727 = vst [vmem:[#allocation20 + $0x8] sm:$0xff] %v1779_v34 }
 0x727   :  { %1728 = vst [vmem:[#allocation20 + $0x10] sm:$0xff] %v1780_v18  ;;  %1731 = vst.msk [vmem:[#allocation20 + $0x18] sm:$0xff] %vm1730_vm4, %v1781_v35 }
 0x728   :  { %2085 = shalt.err (!%p2082_p3)
}
 0x729   :  { %1741 = dma.vmem_to_hbm [thread:$0]  %s1739_s6, 512, %s2528_s13, [#allocation4]  }
 0x72a   :  { %2106 = dma.done.wait [#allocation4], 512  }
 0x72b   :  { %2107 = vsyncadd [#allocation4], 4294966784 }
 0x72c   :  { %1745 = vsyncpa [#allocation3], 1 }
 0x72d   :  { %1746 = vsyncpa [#allocation6], 1 }
 0x72e   :  { %1747 = vsyncpa [#allocation9], 1 }
 0x72f   :  { %1748 = vsyncpa [#allocation12], 1 }
 0x730   :  { %1749 = vsyncpa [#allocation15], 1 }
 0x731   :  { %1750 = vsyncpa [#allocation18], 1 }
 0x732   :  { %1751 = vsyncpa [#allocation4], 1 }

</bundles_post_ra>
